<compile_context>
chip_gen: v6e
topology: v6e:2x2x1
jax: 0.10.0
libtpu: 0.0.40
codegen_flags: <defaults>
</compile_context>

<pallas_src>
import math

import jax
import jax.numpy as jnp
from jax.experimental import pallas as pl
from jax.experimental.pallas import tpu as pltpu

K = 7          # DoubleConv kernel size
PAD = 3        # DoubleConv padding
POOL = 4       # down_sample window (Linear(4, ...) over groups of 4 samples)
N_HEADS = 4    # AttentionLayer(..., 4, ...) is hard-coded in Down.__init__
BN_EPS = 1e-5


# --------------------------------- kernel ---------------------------------- #

def _down_kernel(x_ref,
                 a1_ref, b1_ref, a2_ref, b2_ref, a3_ref, b3_ref,
                 wqkv_ref, bqkv_ref, wot_ref, bo_ref,
                 w1m_ref, s1_ref, t1_ref, w2m_ref, s2_ref, t2_ref,
                 o_ref,
                 pad1_ref, pad2_ref):
    f32 = jnp.float32
    x = x_ref[0].astype(f32)                   # (C, L)   one batch element
    C = x.shape[0]
    T = a3_ref.shape[1]                        # L // 4  (= attention d_model)
    H = wot_ref.shape[0]
    E = wot_ref.shape[1]
    D = wot_ref.shape[2]

    # ---- stage 1: down_sample MLP (window de-interleave folded into layer 1) -
    h1 = jnp.maximum(jnp.dot(x, a1_ref[...], preferred_element_type=f32)
                     + b1_ref[...], 0.0)                              # (C, 8T)
    h2 = jnp.maximum(jnp.dot(h1, a2_ref[...], preferred_element_type=f32)
                     + b2_ref[...], 0.0)                              # (C, 4T)
    z = jnp.dot(h2, a3_ref[...], preferred_element_type=f32) + b3_ref[...]  # (C, T)

    # ---- stage 2: 4-head self-attention over the channel (sequence) axis ----
    qkv = jnp.dot(z, wqkv_ref[...], preferred_element_type=f32) + bqkv_ref[...]  # (C, 3D)
    q = qkv[:, 0:D]
    k = qkv[:, D:2 * D]
    v = qkv[:, 2 * D:3 * D]
    scale = 1.0 / math.sqrt(E)

    att = jnp.zeros((C, D), f32)
    for h in range(H):                                  # static unroll (H = 4)
        qh = q[:, h * E:(h + 1) * E]                    # (C, E)
        kh = k[:, h * E:(h + 1) * E]
        vh = v[:, h * E:(h + 1) * E]
        s = jax.lax.dot_general(qh, kh, (((1,), (1,)), ((), ())),
                                preferred_element_type=f32) * scale   # (C, C)
        s = s - jnp.max(s, axis=-1, keepdims=True)
        p = jnp.exp(s)
        p = p / jnp.sum(p, axis=-1, keepdims=True)      # eval: dropout = identity
        oh = jnp.dot(p, vh, preferred_element_type=f32)               # (C, E)
        # out_projection applied per head and accumulated (avoids a concat)
        att = att + jnp.dot(oh, wot_ref[h], preferred_element_type=f32)  # (C, D)
    att = att + bo_ref[...]

    # ---- stage 3: DoubleConv — one matmul per conv via in-VMEM im2col -------
    def conv_bn_relu(h_in, pad_ref, wm_ref, s_ref, t_ref):
        cin = pad_ref.shape[0]
        # zero only the 2*PAD border lanes, then write the payload
        pad_ref[:, :PAD] = jnp.zeros((cin, PAD), f32)
        pad_ref[:, PAD + T:] = jnp.zeros((cin, PAD), f32)
        pad_ref[:, PAD:PAD + T] = h_in
        g = jnp.concatenate([pad_ref[:, kk:kk + T] for kk in range(K)],
                            axis=0)                                   # (K*cin, T)
        c = jnp.dot(wm_ref[...], g, preferred_element_type=f32)       # (Co, T)
        return jnp.maximum(c * s_ref[...] + t_ref[...], 0.0)          # folded BN+bias

    c1 = conv_bn_relu(att, pad1_ref, w1m_ref, s1_ref, t1_ref)         # (Co, T)
    c2 = conv_bn_relu(c1, pad2_ref, w2m_ref, s2_ref, t2_ref)          # (Co, T)
    o_ref[0] = c2.astype(o_ref.dtype)                                 # NCL output


# ----------------------------- weight packing ------------------------------ #

def pack_down_params(p, length):
    """Pack / fold PyTorch-layout parameters once, outside the jitted forward."""
    T = length // POOL
    eye_t = jnp.eye(T, dtype=jnp.float32)

    # down_sample MLP: fold the (L -> T x 4) de-interleave into layer 1.
    a1 = jnp.einsum('ji,tu->tiju', p['ds_w1'], eye_t).reshape(length, 8 * T)
    b1 = jnp.repeat(p['ds_b1'], T)[None, :]
    a2 = jnp.einsum('kj,tu->jtku', p['ds_w2'], eye_t).reshape(8 * T, 4 * T)
    b2 = jnp.repeat(p['ds_b2'], T)[None, :]
    a3 = jnp.einsum('k,tu->ktu', p['ds_w3'][0], eye_t).reshape(4 * T, T)
    b3 = jnp.full((1, T), p['ds_b3'][0], jnp.float32)

    # attention projections (PyTorch Linear weights are (out, in)).
    d_model = p['wo'].shape[0]
    e_head = p['wo'].shape[1] // N_HEADS
    wqkv = jnp.concatenate([p['wq'].T, p['wk'].T, p['wv'].T], axis=1)   # (D, 3D)
    bqkv = jnp.concatenate([p['bq'], p['bk'], p['bv']])[None, :]        # (1, 3D)
    wot = p['wo'].T.reshape(N_HEADS, e_head, d_model)                   # (H, E, D)
    bo = p['bo'][None, :]

    # DoubleConv: im2col weight layout + eval-mode BN / conv-bias fold.
    def conv_w(w):                                   # (Co, Cin, K) -> (Co, K*Cin)
        return jnp.transpose(w, (0, 2, 1)).reshape(w.shape[0], -1)

    def fold(gamma, beta, bias):
        scale = gamma / jnp.sqrt(1.0 + BN_EPS)       # running_mean=0, running_var=1
        return scale[:, None], (scale * bias + beta)[:, None]

    s1, t1 = fold(p['bn1_g'], p['bn1_b'], p['c1_b'])
    s2, t2 = fold(p['bn2_g'], p['bn2_b'], p['c2_b'])
    return dict(a1=a1, b1=b1, a2=a2, b2=b2, a3=a3, b3=b3,
                wqkv=wqkv, bqkv=bqkv, wot=wot, bo=bo,
                w1m=conv_w(p['c1_w']), s1=s1, t1=t1,
                w2m=conv_w(p['c2_w']), s2=s2, t2=t2)


_WEIGHT_ORDER = ('a1', 'b1', 'a2', 'b2', 'a3', 'b3',
                 'wqkv', 'bqkv', 'wot', 'bo',
                 'w1m', 's1', 't1', 'w2m', 's2', 't2')


# --------------------------------- wrapper --------------------------------- #

@jax.jit
def down_forward(x, packed):
    """Fused Pallas forward of Down. x: (B, C, L) f32 -> (B, out_channels, L//4)."""
    B, C, L = x.shape
    T = L // POOL
    Co = packed['w1m'].shape[0]

    def batch_spec(shape):
        nd = len(shape)
        return pl.BlockSpec((1,) + tuple(shape[1:]),
                            lambda b, _n=nd: (b,) + (0,) * (_n - 1))

    def full_spec(shape):
        nd = len(shape)
        return pl.BlockSpec(tuple(shape), lambda b, _n=nd: (0,) * _n)

    in_specs = ([batch_spec(x.shape)]
                + [full_spec(packed[n].shape) for n in _WEIGHT_ORDER])

    return pl.pallas_call(
        _down_kernel,
        out_shape=jax.ShapeDtypeStruct((B, Co, T), jnp.float32),
        grid=(B,),
        in_specs=in_specs,
        out_specs=pl.BlockSpec((1, Co, T), lambda b: (b, 0, 0)),
        scratch_shapes=[pltpu.VMEM((C, T + 2 * PAD), jnp.float32),
                        pltpu.VMEM((Co, T + 2 * PAD), jnp.float32)],
        compiler_params=pltpu.CompilerParams(
            dimension_semantics=("parallel",),
            vmem_limit_bytes=32 * 1024 * 1024),
    )(x, *[packed[n] for n in _WEIGHT_ORDER])


# ----------------------------- pure-JAX reference -------------------------- #

def down_forward_ref(x, p):
    """Eval-mode reference of Down.forward (PyTorch semantics)."""
    hi = jax.lax.Precision.HIGHEST
    B, C, L = x.shape
    T = L // POOL

    # down_sample MLP on non-overlapping windows of 4
    y = x.reshape(B * C, T, POOL)
    h = jnp.maximum(jnp.einsum('bti,ji->btj', y, p['ds_w1'], precision=hi)
                    + p['ds_b1'], 0.0)
    h = jnp.maximum(jnp.einsum('btj,kj->btk', h, p['ds_w2'], precision=hi)
                    + p['ds_b2'], 0.0)
    z = (jnp.einsum('btk,ok->bto', h, p['ds_w3'], precision=hi)
         + p['ds_b3'])[..., 0]
    z = z.reshape(B, C, T)

    # 4-head self-attention (sequence = channel axis, d_model = T)
    D, H = T, N_HEADS
    E = D // H
    q = (jnp.einsum('bld,ed->ble', z, p['wq'], precision=hi) + p['bq']).reshape(B, C, H, E)
    k = (jnp.einsum('bld,ed->ble', z, p['wk'], precision=hi) + p['bk']).reshape(B, C, H, E)
    v = (jnp.einsum('bld,ed->ble', z, p['wv'], precision=hi) + p['bv']).reshape(B, C, H, E)
    scores = jnp.einsum('blhe,bshe->bhls', q, k, precision=hi) / math.sqrt(E)
    a = jax.nn.softmax(scores, axis=-1)                     # eval: dropout = identity
    out = jnp.einsum('bhls,bshd->blhd', a, v, precision=hi).reshape(B, C, D)
    att = jnp.einsum('bld,ed->ble', out, p['wo'], precision=hi) + p['bo']

    # DoubleConv, eval-mode BN (running_mean=0, running_var=1, eps=1e-5)
    def conv_bn_relu(hh, w, b, g, beta):
        Co = w.shape[0]
        Lh = hh.shape[2]
        hp = jnp.pad(hh, ((0, 0), (0, 0), (PAD, PAD)))
        o = jnp.zeros((hh.shape[0], Co, Lh), jnp.float32)
        for kk in range(K):
            o = o + jnp.einsum('ncl,oc->nol', hp[:, :, kk:kk + Lh], w[:, :, kk],
                               precision=hi)
        o = o + b[None, :, None]
        o = g[None, :, None] * o / jnp.sqrt(1.0 + BN_EPS) + beta[None, :, None]
        return jnp.maximum(o, 0.0)

    h1 = conv_bn_relu(att, p['c1_w'], p['c1_b'], p['bn1_g'], p['bn1_b'])
    return conv_bn_relu(h1, p['c2_w'], p['c2_b'], p['bn2_g'], p['bn2_b'])


# ----------------------------------- main ----------------------------------- #

if __name__ == "__main__":
    key = jax.random.PRNGKey(0)
    B = 2
    in_channels = 8            # = C = x channel count = DoubleConv in_channels
    out_channels = 16
    L = 64                     # attention d_model = L // 4 = 16, heads = 4
    T = L // POOL
    D = T

    ks = jax.random.split(key, 24)
    r = lambda i, shape, s=0.2: s * jax.random.normal(ks[i], shape, jnp.float32)
    params = {
        # down_sample: Linear(4,8)->ReLU->Linear(8,4)->ReLU->Linear(4,1)
        'ds_w1': r(0, (8, POOL), 0.4), 'ds_b1': r(1, (8,), 0.1),
        'ds_w2': r(2, (4, 8), 0.4),    'ds_b2': r(3, (4,), 0.1),
        'ds_w3': r(4, (1, 4), 0.4),    'ds_b3': r(5, (1,), 0.1),
        # AttentionLayer(d_model=D, n_heads=4) projections (PyTorch (out, in))
        'wq': r(6, (D, D), 0.3),  'bq': r(7, (D,), 0.1),
        'wk': r(8, (D, D), 0.3),  'bk': r(9, (D,), 0.1),
        'wv': r(10, (D, D), 0.3), 'bv': r(11, (D,), 0.1),
        'wo': r(12, (D, D), 0.3), 'bo': r(13, (D,), 0.1),
        # DoubleConv(in_channels, out_channels)
        'c1_w': r(14, (out_channels, in_channels, K), 0.2),
        'c1_b': r(15, (out_channels,), 0.1),
        'bn1_g': 1.0 + r(16, (out_channels,), 0.1),
        'bn1_b': r(17, (out_channels,), 0.1),
        'c2_w': r(18, (out_channels, out_channels, K), 0.2),
        'c2_b': r(19, (out_channels,), 0.1),
        'bn2_g': 1.0 + r(20, (out_channels,), 0.1),
        'bn2_b': r(21, (out_channels,), 0.1),
    }
    x = jax.random.normal(ks[22], (B, in_channels, L), jnp.float32)

    packed = pack_down_params(params, L)     # one-time host-side packing
    out = jax.block_until_ready(down_forward(x, packed))
    ref = down_forward_ref(x, params)

    assert out.shape == (B, out_channels, T), out.shape
    err = float(jnp.max(jnp.abs(out - ref)))
    # tolerance covers possible bf16-pass MXU matmul rounding on either side
    if err > 2e-3:
        raise AssertionError(f"mismatch vs reference: max abs err {err}")
    print("KERNEL_OK")
</pallas_src>

<mosaic_0001>
module attributes {stable_mosaic.version = 11 : i64} {
  func.func @_down_kernel(%arg0: i32, %arg1: memref<1x8x64xf32, #tpu.memory_space<vmem>>, %arg2: memref<64x128xf32, #tpu.memory_space<vmem>>, %arg3: memref<1x128xf32, #tpu.memory_space<vmem>>, %arg4: memref<128x64xf32, #tpu.memory_space<vmem>>, %arg5: memref<1x64xf32, #tpu.memory_space<vmem>>, %arg6: memref<64x16xf32, #tpu.memory_space<vmem>>, %arg7: memref<1x16xf32, #tpu.memory_space<vmem>>, %arg8: memref<16x48xf32, #tpu.memory_space<vmem>>, %arg9: memref<1x48xf32, #tpu.memory_space<vmem>>, %arg10: memref<4x4x16xf32, #tpu.memory_space<vmem>>, %arg11: memref<1x16xf32, #tpu.memory_space<vmem>>, %arg12: memref<16x56xf32, #tpu.memory_space<vmem>>, %arg13: memref<16x1xf32, #tpu.memory_space<vmem>>, %arg14: memref<16x1xf32, #tpu.memory_space<vmem>>, %arg15: memref<16x112xf32, #tpu.memory_space<vmem>>, %arg16: memref<16x1xf32, #tpu.memory_space<vmem>>, %arg17: memref<16x1xf32, #tpu.memory_space<vmem>>, %arg18: memref<1x16x16xf32, #tpu.memory_space<vmem>>, %arg19: memref<8x22xf32, #tpu.memory_space<vmem>>, %arg20: memref<16x22xf32, #tpu.memory_space<vmem>>) attributes {dimension_semantics = [#tpu.dimension_semantics<parallel>], iteration_bounds = array<i64: 2>, scalar_prefetch = 0 : i64, scratch_operands = 2 : i64, tpu.core_type = #tpu.core_type<tc>, window_params = [{transform_indices = @transform_0, window_bounds = array<i64: 1, 8, 64>}, {pipeline_mode = #tpu.pipeline_mode<synchronous>, transform_indices = @transform_1, window_bounds = array<i64: 64, 128>}, {pipeline_mode = #tpu.pipeline_mode<synchronous>, transform_indices = @transform_2, window_bounds = array<i64: 1, 128>}, {pipeline_mode = #tpu.pipeline_mode<synchronous>, transform_indices = @transform_3, window_bounds = array<i64: 128, 64>}, {pipeline_mode = #tpu.pipeline_mode<synchronous>, transform_indices = @transform_4, window_bounds = array<i64: 1, 64>}, {pipeline_mode = #tpu.pipeline_mode<synchronous>, transform_indices = @transform_5, window_bounds = array<i64: 64, 16>}, {pipeline_mode = #tpu.pipeline_mode<synchronous>, transform_indices = @transform_6, window_bounds = array<i64: 1, 16>}, {pipeline_mode = #tpu.pipeline_mode<synchronous>, transform_indices = @transform_7, window_bounds = array<i64: 16, 48>}, {pipeline_mode = #tpu.pipeline_mode<synchronous>, transform_indices = @transform_8, window_bounds = array<i64: 1, 48>}, {pipeline_mode = #tpu.pipeline_mode<synchronous>, transform_indices = @transform_9, window_bounds = array<i64: 4, 4, 16>}, {pipeline_mode = #tpu.pipeline_mode<synchronous>, transform_indices = @transform_10, window_bounds = array<i64: 1, 16>}, {pipeline_mode = #tpu.pipeline_mode<synchronous>, transform_indices = @transform_11, window_bounds = array<i64: 16, 56>}, {pipeline_mode = #tpu.pipeline_mode<synchronous>, transform_indices = @transform_12, window_bounds = array<i64: 16, 1>}, {pipeline_mode = #tpu.pipeline_mode<synchronous>, transform_indices = @transform_13, window_bounds = array<i64: 16, 1>}, {pipeline_mode = #tpu.pipeline_mode<synchronous>, transform_indices = @transform_14, window_bounds = array<i64: 16, 112>}, {pipeline_mode = #tpu.pipeline_mode<synchronous>, transform_indices = @transform_15, window_bounds = array<i64: 16, 1>}, {pipeline_mode = #tpu.pipeline_mode<synchronous>, transform_indices = @transform_16, window_bounds = array<i64: 16, 1>}, {transform_indices = @transform_17, window_bounds = array<i64: 1, 16, 16>}]} {
    %c0 = arith.constant 0 : index
    %c0_0 = arith.constant 0 : index
    %c0_1 = arith.constant 0 : index
    %0 = vector.load %arg1[%c0, %c0_0, %c0_1] : memref<1x8x64xf32, #tpu.memory_space<vmem>>, vector<1x8x64xf32>
    %1 = vector.shape_cast %0 : vector<1x8x64xf32> to vector<8x64xf32>
    %c0_2 = arith.constant 0 : index
    %c0_3 = arith.constant 0 : index
    %2 = vector.load %arg2[%c0_2, %c0_3] : memref<64x128xf32, #tpu.memory_space<vmem>>, vector<64x128xf32>
    %cst = arith.constant dense<0.000000e+00> : vector<8x128xf32>
    %3 = tpu.matmul %1, %2, %cst {dimension_numbers = #tpu.dot_dimension_numbers<[1], [0], [0], [1], [0, 0, 1, 1], [], []>} : vector<8x64xf32>, vector<64x128xf32>, vector<8x128xf32> -> vector<8x128xf32>
    %c0_4 = arith.constant 0 : index
    %c0_5 = arith.constant 0 : index
    %4 = vector.load %arg3[%c0_4, %c0_5] : memref<1x128xf32, #tpu.memory_space<vmem>>, vector<1x128xf32>
    %5 = vector.broadcast %4 : vector<1x128xf32> to vector<8x128xf32>
    %6 = arith.addf %3, %5 : vector<8x128xf32>
    %cst_6 = arith.constant 0.000000e+00 : f32
    %7 = vector.broadcast %cst_6 : f32 to vector<8x128xf32>
    %8 = arith.maximumf %6, %7 : vector<8x128xf32>
    %c0_7 = arith.constant 0 : index
    %c0_8 = arith.constant 0 : index
    %9 = vector.load %arg4[%c0_7, %c0_8] : memref<128x64xf32, #tpu.memory_space<vmem>>, vector<128x64xf32>
    %cst_9 = arith.constant dense<0.000000e+00> : vector<8x64xf32>
    %10 = tpu.matmul %8, %9, %cst_9 {dimension_numbers = #tpu.dot_dimension_numbers<[1], [0], [0], [1], [0, 0, 1, 1], [], []>} : vector<8x128xf32>, vector<128x64xf32>, vector<8x64xf32> -> vector<8x64xf32>
    %c0_10 = arith.constant 0 : index
    %c0_11 = arith.constant 0 : index
    %11 = vector.load %arg5[%c0_10, %c0_11] : memref<1x64xf32, #tpu.memory_space<vmem>>, vector<1x64xf32>
    %12 = vector.broadcast %11 : vector<1x64xf32> to vector<8x64xf32>
    %13 = arith.addf %10, %12 : vector<8x64xf32>
    %cst_12 = arith.constant 0.000000e+00 : f32
    %14 = vector.broadcast %cst_12 : f32 to vector<8x64xf32>
    %15 = arith.maximumf %13, %14 : vector<8x64xf32>
    %c0_13 = arith.constant 0 : index
    %c0_14 = arith.constant 0 : index
    %16 = vector.load %arg6[%c0_13, %c0_14] : memref<64x16xf32, #tpu.memory_space<vmem>>, vector<64x16xf32>
    %cst_15 = arith.constant dense<0.000000e+00> : vector<8x16xf32>
    %17 = tpu.matmul %15, %16, %cst_15 {dimension_numbers = #tpu.dot_dimension_numbers<[1], [0], [0], [1], [0, 0, 1, 1], [], []>} : vector<8x64xf32>, vector<64x16xf32>, vector<8x16xf32> -> vector<8x16xf32>
    %c0_16 = arith.constant 0 : index
    %c0_17 = arith.constant 0 : index
    %18 = vector.load %arg7[%c0_16, %c0_17] : memref<1x16xf32, #tpu.memory_space<vmem>>, vector<1x16xf32>
    %19 = vector.broadcast %18 : vector<1x16xf32> to vector<8x16xf32>
    %20 = arith.addf %17, %19 : vector<8x16xf32>
    %c0_18 = arith.constant 0 : index
    %c0_19 = arith.constant 0 : index
    %21 = vector.load %arg8[%c0_18, %c0_19] : memref<16x48xf32, #tpu.memory_space<vmem>>, vector<16x48xf32>
    %cst_20 = arith.constant dense<0.000000e+00> : vector<8x48xf32>
    %22 = tpu.matmul %20, %21, %cst_20 {dimension_numbers = #tpu.dot_dimension_numbers<[1], [0], [0], [1], [0, 0, 1, 1], [], []>} : vector<8x16xf32>, vector<16x48xf32>, vector<8x48xf32> -> vector<8x48xf32>
    %c0_21 = arith.constant 0 : index
    %c0_22 = arith.constant 0 : index
    %23 = vector.load %arg9[%c0_21, %c0_22] : memref<1x48xf32, #tpu.memory_space<vmem>>, vector<1x48xf32>
    %24 = vector.broadcast %23 : vector<1x48xf32> to vector<8x48xf32>
    %25 = arith.addf %22, %24 : vector<8x48xf32>
    %26 = vector.extract_strided_slice %25 {offsets = [0, 0], sizes = [8, 16], strides = [1, 1]} : vector<8x48xf32> to vector<8x16xf32>
    %27 = vector.extract_strided_slice %25 {offsets = [0, 16], sizes = [8, 16], strides = [1, 1]} : vector<8x48xf32> to vector<8x16xf32>
    %28 = vector.extract_strided_slice %25 {offsets = [0, 32], sizes = [8, 16], strides = [1, 1]} : vector<8x48xf32> to vector<8x16xf32>
    %cst_23 = arith.constant 0.000000e+00 : f32
    %29 = vector.broadcast %cst_23 : f32 to vector<8x16xf32>
    %30 = vector.extract_strided_slice %26 {offsets = [0, 0], sizes = [8, 4], strides = [1, 1]} : vector<8x16xf32> to vector<8x4xf32>
    %31 = vector.extract_strided_slice %27 {offsets = [0, 0], sizes = [8, 4], strides = [1, 1]} : vector<8x16xf32> to vector<8x4xf32>
    %32 = vector.extract_strided_slice %28 {offsets = [0, 0], sizes = [8, 4], strides = [1, 1]} : vector<8x16xf32> to vector<8x4xf32>
    %cst_24 = arith.constant dense<0.000000e+00> : vector<8x8xf32>
    %33 = tpu.matmul %30, %31, %cst_24 {dimension_numbers = #tpu.dot_dimension_numbers<[1], [1], [0], [0], [0, 0, 1, 0], [], []>} : vector<8x4xf32>, vector<8x4xf32>, vector<8x8xf32> -> vector<8x8xf32>
    %cst_25 = arith.constant 5.000000e-01 : f32
    %34 = vector.broadcast %cst_25 : f32 to vector<8x8xf32>
    %35 = arith.mulf %33, %34 : vector<8x8xf32>
    %cst_26 = arith.constant dense<0xFF800000> : vector<8xf32>
    %36 = vector.multi_reduction <maximumf>, %35, %cst_26 [1] : vector<8x8xf32> to vector<8xf32>
    %37 = vector.shape_cast %36 : vector<8xf32> to vector<8x1xf32>
    %38 = vector.broadcast %37 : vector<8x1xf32> to vector<8x8xf32>
    %39 = arith.subf %35, %38 : vector<8x8xf32>
    %40 = math.exp %39 : vector<8x8xf32>
    %cst_27 = arith.constant dense<0.000000e+00> : vector<8xf32>
    %41 = vector.multi_reduction <add>, %40, %cst_27 [1] : vector<8x8xf32> to vector<8xf32>
    %42 = vector.shape_cast %41 : vector<8xf32> to vector<8x1xf32>
    %43 = vector.broadcast %42 : vector<8x1xf32> to vector<8x8xf32>
    %44 = arith.divf %40, %43 : vector<8x8xf32>
    %cst_28 = arith.constant dense<0.000000e+00> : vector<8x4xf32>
    %45 = tpu.matmul %44, %32, %cst_28 {dimension_numbers = #tpu.dot_dimension_numbers<[1], [0], [0], [1], [0, 0, 1, 1], [], []>} : vector<8x8xf32>, vector<8x4xf32>, vector<8x4xf32> -> vector<8x4xf32>
    %c0_29 = arith.constant 0 : index
    %c0_30 = arith.constant 0 : index
    %c0_31 = arith.constant 0 : index
    %46 = vector.load %arg10[%c0_29, %c0_30, %c0_31] : memref<4x4x16xf32, #tpu.memory_space<vmem>>, vector<1x4x16xf32>
    %47 = vector.shape_cast %46 : vector<1x4x16xf32> to vector<4x16xf32>
    %cst_32 = arith.constant dense<0.000000e+00> : vector<8x16xf32>
    %48 = tpu.matmul %45, %47, %cst_32 {dimension_numbers = #tpu.dot_dimension_numbers<[1], [0], [0], [1], [0, 0, 1, 1], [], []>} : vector<8x4xf32>, vector<4x16xf32>, vector<8x16xf32> -> vector<8x16xf32>
    %49 = arith.addf %29, %48 : vector<8x16xf32>
    %50 = vector.extract_strided_slice %26 {offsets = [0, 4], sizes = [8, 4], strides = [1, 1]} : vector<8x16xf32> to vector<8x4xf32>
    %51 = vector.extract_strided_slice %27 {offsets = [0, 4], sizes = [8, 4], strides = [1, 1]} : vector<8x16xf32> to vector<8x4xf32>
    %52 = vector.extract_strided_slice %28 {offsets = [0, 4], sizes = [8, 4], strides = [1, 1]} : vector<8x16xf32> to vector<8x4xf32>
    %cst_33 = arith.constant dense<0.000000e+00> : vector<8x8xf32>
    %53 = tpu.matmul %50, %51, %cst_33 {dimension_numbers = #tpu.dot_dimension_numbers<[1], [1], [0], [0], [0, 0, 1, 0], [], []>} : vector<8x4xf32>, vector<8x4xf32>, vector<8x8xf32> -> vector<8x8xf32>
    %cst_34 = arith.constant 5.000000e-01 : f32
    %54 = vector.broadcast %cst_34 : f32 to vector<8x8xf32>
    %55 = arith.mulf %53, %54 : vector<8x8xf32>
    %cst_35 = arith.constant dense<0xFF800000> : vector<8xf32>
    %56 = vector.multi_reduction <maximumf>, %55, %cst_35 [1] : vector<8x8xf32> to vector<8xf32>
    %57 = vector.shape_cast %56 : vector<8xf32> to vector<8x1xf32>
    %58 = vector.broadcast %57 : vector<8x1xf32> to vector<8x8xf32>
    %59 = arith.subf %55, %58 : vector<8x8xf32>
    %60 = math.exp %59 : vector<8x8xf32>
    %cst_36 = arith.constant dense<0.000000e+00> : vector<8xf32>
    %61 = vector.multi_reduction <add>, %60, %cst_36 [1] : vector<8x8xf32> to vector<8xf32>
    %62 = vector.shape_cast %61 : vector<8xf32> to vector<8x1xf32>
    %63 = vector.broadcast %62 : vector<8x1xf32> to vector<8x8xf32>
    %64 = arith.divf %60, %63 : vector<8x8xf32>
    %cst_37 = arith.constant dense<0.000000e+00> : vector<8x4xf32>
    %65 = tpu.matmul %64, %52, %cst_37 {dimension_numbers = #tpu.dot_dimension_numbers<[1], [0], [0], [1], [0, 0, 1, 1], [], []>} : vector<8x8xf32>, vector<8x4xf32>, vector<8x4xf32> -> vector<8x4xf32>
    %c1 = arith.constant 1 : index
    %c0_38 = arith.constant 0 : index
    %c0_39 = arith.constant 0 : index
    %66 = vector.load %arg10[%c1, %c0_38, %c0_39] : memref<4x4x16xf32, #tpu.memory_space<vmem>>, vector<1x4x16xf32>
    %67 = vector.shape_cast %66 : vector<1x4x16xf32> to vector<4x16xf32>
    %cst_40 = arith.constant dense<0.000000e+00> : vector<8x16xf32>
    %68 = tpu.matmul %65, %67, %cst_40 {dimension_numbers = #tpu.dot_dimension_numbers<[1], [0], [0], [1], [0, 0, 1, 1], [], []>} : vector<8x4xf32>, vector<4x16xf32>, vector<8x16xf32> -> vector<8x16xf32>
    %69 = arith.addf %49, %68 : vector<8x16xf32>
    %70 = vector.extract_strided_slice %26 {offsets = [0, 8], sizes = [8, 4], strides = [1, 1]} : vector<8x16xf32> to vector<8x4xf32>
    %71 = vector.extract_strided_slice %27 {offsets = [0, 8], sizes = [8, 4], strides = [1, 1]} : vector<8x16xf32> to vector<8x4xf32>
    %72 = vector.extract_strided_slice %28 {offsets = [0, 8], sizes = [8, 4], strides = [1, 1]} : vector<8x16xf32> to vector<8x4xf32>
    %cst_41 = arith.constant dense<0.000000e+00> : vector<8x8xf32>
    %73 = tpu.matmul %70, %71, %cst_41 {dimension_numbers = #tpu.dot_dimension_numbers<[1], [1], [0], [0], [0, 0, 1, 0], [], []>} : vector<8x4xf32>, vector<8x4xf32>, vector<8x8xf32> -> vector<8x8xf32>
    %cst_42 = arith.constant 5.000000e-01 : f32
    %74 = vector.broadcast %cst_42 : f32 to vector<8x8xf32>
    %75 = arith.mulf %73, %74 : vector<8x8xf32>
    %cst_43 = arith.constant dense<0xFF800000> : vector<8xf32>
    %76 = vector.multi_reduction <maximumf>, %75, %cst_43 [1] : vector<8x8xf32> to vector<8xf32>
    %77 = vector.shape_cast %76 : vector<8xf32> to vector<8x1xf32>
    %78 = vector.broadcast %77 : vector<8x1xf32> to vector<8x8xf32>
    %79 = arith.subf %75, %78 : vector<8x8xf32>
    %80 = math.exp %79 : vector<8x8xf32>
    %cst_44 = arith.constant dense<0.000000e+00> : vector<8xf32>
    %81 = vector.multi_reduction <add>, %80, %cst_44 [1] : vector<8x8xf32> to vector<8xf32>
    %82 = vector.shape_cast %81 : vector<8xf32> to vector<8x1xf32>
    %83 = vector.broadcast %82 : vector<8x1xf32> to vector<8x8xf32>
    %84 = arith.divf %80, %83 : vector<8x8xf32>
    %cst_45 = arith.constant dense<0.000000e+00> : vector<8x4xf32>
    %85 = tpu.matmul %84, %72, %cst_45 {dimension_numbers = #tpu.dot_dimension_numbers<[1], [0], [0], [1], [0, 0, 1, 1], [], []>} : vector<8x8xf32>, vector<8x4xf32>, vector<8x4xf32> -> vector<8x4xf32>
    %c2 = arith.constant 2 : index
    %c0_46 = arith.constant 0 : index
    %c0_47 = arith.constant 0 : index
    %86 = vector.load %arg10[%c2, %c0_46, %c0_47] : memref<4x4x16xf32, #tpu.memory_space<vmem>>, vector<1x4x16xf32>
    %87 = vector.shape_cast %86 : vector<1x4x16xf32> to vector<4x16xf32>
    %cst_48 = arith.constant dense<0.000000e+00> : vector<8x16xf32>
    %88 = tpu.matmul %85, %87, %cst_48 {dimension_numbers = #tpu.dot_dimension_numbers<[1], [0], [0], [1], [0, 0, 1, 1], [], []>} : vector<8x4xf32>, vector<4x16xf32>, vector<8x16xf32> -> vector<8x16xf32>
    %89 = arith.addf %69, %88 : vector<8x16xf32>
    %90 = vector.extract_strided_slice %26 {offsets = [0, 12], sizes = [8, 4], strides = [1, 1]} : vector<8x16xf32> to vector<8x4xf32>
    %91 = vector.extract_strided_slice %27 {offsets = [0, 12], sizes = [8, 4], strides = [1, 1]} : vector<8x16xf32> to vector<8x4xf32>
    %92 = vector.extract_strided_slice %28 {offsets = [0, 12], sizes = [8, 4], strides = [1, 1]} : vector<8x16xf32> to vector<8x4xf32>
    %cst_49 = arith.constant dense<0.000000e+00> : vector<8x8xf32>
    %93 = tpu.matmul %90, %91, %cst_49 {dimension_numbers = #tpu.dot_dimension_numbers<[1], [1], [0], [0], [0, 0, 1, 0], [], []>} : vector<8x4xf32>, vector<8x4xf32>, vector<8x8xf32> -> vector<8x8xf32>
    %cst_50 = arith.constant 5.000000e-01 : f32
    %94 = vector.broadcast %cst_50 : f32 to vector<8x8xf32>
    %95 = arith.mulf %93, %94 : vector<8x8xf32>
    %cst_51 = arith.constant dense<0xFF800000> : vector<8xf32>
    %96 = vector.multi_reduction <maximumf>, %95, %cst_51 [1] : vector<8x8xf32> to vector<8xf32>
    %97 = vector.shape_cast %96 : vector<8xf32> to vector<8x1xf32>
    %98 = vector.broadcast %97 : vector<8x1xf32> to vector<8x8xf32>
    %99 = arith.subf %95, %98 : vector<8x8xf32>
    %100 = math.exp %99 : vector<8x8xf32>
    %cst_52 = arith.constant dense<0.000000e+00> : vector<8xf32>
    %101 = vector.multi_reduction <add>, %100, %cst_52 [1] : vector<8x8xf32> to vector<8xf32>
    %102 = vector.shape_cast %101 : vector<8xf32> to vector<8x1xf32>
    %103 = vector.broadcast %102 : vector<8x1xf32> to vector<8x8xf32>
    %104 = arith.divf %100, %103 : vector<8x8xf32>
    %cst_53 = arith.constant dense<0.000000e+00> : vector<8x4xf32>
    %105 = tpu.matmul %104, %92, %cst_53 {dimension_numbers = #tpu.dot_dimension_numbers<[1], [0], [0], [1], [0, 0, 1, 1], [], []>} : vector<8x8xf32>, vector<8x4xf32>, vector<8x4xf32> -> vector<8x4xf32>
    %c3 = arith.constant 3 : index
    %c0_54 = arith.constant 0 : index
    %c0_55 = arith.constant 0 : index
    %106 = vector.load %arg10[%c3, %c0_54, %c0_55] : memref<4x4x16xf32, #tpu.memory_space<vmem>>, vector<1x4x16xf32>
    %107 = vector.shape_cast %106 : vector<1x4x16xf32> to vector<4x16xf32>
    %cst_56 = arith.constant dense<0.000000e+00> : vector<8x16xf32>
    %108 = tpu.matmul %105, %107, %cst_56 {dimension_numbers = #tpu.dot_dimension_numbers<[1], [0], [0], [1], [0, 0, 1, 1], [], []>} : vector<8x4xf32>, vector<4x16xf32>, vector<8x16xf32> -> vector<8x16xf32>
    %109 = arith.addf %89, %108 : vector<8x16xf32>
    %c0_57 = arith.constant 0 : index
    %c0_58 = arith.constant 0 : index
    %110 = vector.load %arg11[%c0_57, %c0_58] : memref<1x16xf32, #tpu.memory_space<vmem>>, vector<1x16xf32>
    %111 = vector.broadcast %110 : vector<1x16xf32> to vector<8x16xf32>
    %112 = arith.addf %109, %111 : vector<8x16xf32>
    %cst_59 = arith.constant 0.000000e+00 : f32
    %113 = vector.broadcast %cst_59 : f32 to vector<8x3xf32>
    %c0_60 = arith.constant 0 : index
    %c0_61 = arith.constant 0 : index
    %114 = vector.load %arg19[%c0_60, %c0_61] : memref<8x22xf32, #tpu.memory_space<vmem>>, vector<8x3xf32>
    tpu.vector_store %arg19[%c0_60, %c0_61], %113 {strides = array<i32>} : memref<8x22xf32, #tpu.memory_space<vmem>>, vector<8x3xf32>,
    %cst_62 = arith.constant 0.000000e+00 : f32
    %115 = vector.broadcast %cst_62 : f32 to vector<8x3xf32>
    %c0_63 = arith.constant 0 : index
    %c19 = arith.constant 19 : index
    %116 = vector.load %arg19[%c0_63, %c19] : memref<8x22xf32, #tpu.memory_space<vmem>>, vector<8x3xf32>
    tpu.vector_store %arg19[%c0_63, %c19], %115 {strides = array<i32>} : memref<8x22xf32, #tpu.memory_space<vmem>>, vector<8x3xf32>,
    %c0_64 = arith.constant 0 : index
    %c3_65 = arith.constant 3 : index
    %117 = vector.load %arg19[%c0_64, %c3_65] : memref<8x22xf32, #tpu.memory_space<vmem>>, vector<8x16xf32>
    tpu.vector_store %arg19[%c0_64, %c3_65], %112 {strides = array<i32>} : memref<8x22xf32, #tpu.memory_space<vmem>>, vector<8x16xf32>,
    %c0_66 = arith.constant 0 : index
    %c0_67 = arith.constant 0 : index
    %118 = vector.load %arg19[%c0_66, %c0_67] : memref<8x22xf32, #tpu.memory_space<vmem>>, vector<8x16xf32>
    %c0_68 = arith.constant 0 : index
    %c1_69 = arith.constant 1 : index
    %119 = vector.load %arg19[%c0_68, %c1_69] : memref<8x22xf32, #tpu.memory_space<vmem>>, vector<8x16xf32>
    %c0_70 = arith.constant 0 : index
    %c2_71 = arith.constant 2 : index
    %120 = vector.load %arg19[%c0_70, %c2_71] : memref<8x22xf32, #tpu.memory_space<vmem>>, vector<8x16xf32>
    %c0_72 = arith.constant 0 : index
    %c3_73 = arith.constant 3 : index
    %121 = vector.load %arg19[%c0_72, %c3_73] : memref<8x22xf32, #tpu.memory_space<vmem>>, vector<8x16xf32>
    %c0_74 = arith.constant 0 : index
    %c4 = arith.constant 4 : index
    %122 = vector.load %arg19[%c0_74, %c4] : memref<8x22xf32, #tpu.memory_space<vmem>>, vector<8x16xf32>
    %c0_75 = arith.constant 0 : index
    %c5 = arith.constant 5 : index
    %123 = vector.load %arg19[%c0_75, %c5] : memref<8x22xf32, #tpu.memory_space<vmem>>, vector<8x16xf32>
    %c0_76 = arith.constant 0 : index
    %c6 = arith.constant 6 : index
    %124 = vector.load %arg19[%c0_76, %c6] : memref<8x22xf32, #tpu.memory_space<vmem>>, vector<8x16xf32>
    %125 = tpu.concatenate %118, %119, %120, %121, %122, %123, %124 in 0 : vector<8x16xf32>, vector<8x16xf32>, vector<8x16xf32>, vector<8x16xf32>, vector<8x16xf32>, vector<8x16xf32>, vector<8x16xf32> -> vector<56x16xf32>
    %c0_77 = arith.constant 0 : index
    %c0_78 = arith.constant 0 : index
    %126 = vector.load %arg12[%c0_77, %c0_78] : memref<16x56xf32, #tpu.memory_space<vmem>>, vector<16x56xf32>
    %cst_79 = arith.constant dense<0.000000e+00> : vector<16x16xf32>
    %127 = tpu.matmul %126, %125, %cst_79 {dimension_numbers = #tpu.dot_dimension_numbers<[1], [0], [0], [1], [0, 0, 1, 1], [], []>} : vector<16x56xf32>, vector<56x16xf32>, vector<16x16xf32> -> vector<16x16xf32>
    %c0_80 = arith.constant 0 : index
    %c0_81 = arith.constant 0 : index
    %128 = vector.load %arg13[%c0_80, %c0_81] : memref<16x1xf32, #tpu.memory_space<vmem>>, vector<16x1xf32>
    %129 = vector.broadcast %128 : vector<16x1xf32> to vector<16x16xf32>
    %130 = arith.mulf %127, %129 : vector<16x16xf32>
    %c0_82 = arith.constant 0 : index
    %c0_83 = arith.constant 0 : index
    %131 = vector.load %arg14[%c0_82, %c0_83] : memref<16x1xf32, #tpu.memory_space<vmem>>, vector<16x1xf32>
    %132 = vector.broadcast %131 : vector<16x1xf32> to vector<16x16xf32>
    %133 = arith.addf %130, %132 : vector<16x16xf32>
    %cst_84 = arith.constant 0.000000e+00 : f32
    %134 = vector.broadcast %cst_84 : f32 to vector<16x16xf32>
    %135 = arith.maximumf %133, %134 : vector<16x16xf32>
    %cst_85 = arith.constant 0.000000e+00 : f32
    %136 = vector.broadcast %cst_85 : f32 to vector<16x3xf32>
    %c0_86 = arith.constant 0 : index
    %c0_87 = arith.constant 0 : index
    %137 = vector.load %arg20[%c0_86, %c0_87] : memref<16x22xf32, #tpu.memory_space<vmem>>, vector<16x3xf32>
    tpu.vector_store %arg20[%c0_86, %c0_87], %136 {strides = array<i32>} : memref<16x22xf32, #tpu.memory_space<vmem>>, vector<16x3xf32>,
    %cst_88 = arith.constant 0.000000e+00 : f32
    %138 = vector.broadcast %cst_88 : f32 to vector<16x3xf32>
    %c0_89 = arith.constant 0 : index
    %c19_90 = arith.constant 19 : index
    %139 = vector.load %arg20[%c0_89, %c19_90] : memref<16x22xf32, #tpu.memory_space<vmem>>, vector<16x3xf32>
    tpu.vector_store %arg20[%c0_89, %c19_90], %138 {strides = array<i32>} : memref<16x22xf32, #tpu.memory_space<vmem>>, vector<16x3xf32>,
    %c0_91 = arith.constant 0 : index
    %c3_92 = arith.constant 3 : index
    %140 = vector.load %arg20[%c0_91, %c3_92] : memref<16x22xf32, #tpu.memory_space<vmem>>, vector<16x16xf32>
    tpu.vector_store %arg20[%c0_91, %c3_92], %135 {strides = array<i32>} : memref<16x22xf32, #tpu.memory_space<vmem>>, vector<16x16xf32>,
    %c0_93 = arith.constant 0 : index
    %c0_94 = arith.constant 0 : index
    %141 = vector.load %arg20[%c0_93, %c0_94] : memref<16x22xf32, #tpu.memory_space<vmem>>, vector<16x16xf32>
    %c0_95 = arith.constant 0 : index
    %c1_96 = arith.constant 1 : index
    %142 = vector.load %arg20[%c0_95, %c1_96] : memref<16x22xf32, #tpu.memory_space<vmem>>, vector<16x16xf32>
    %c0_97 = arith.constant 0 : index
    %c2_98 = arith.constant 2 : index
    %143 = vector.load %arg20[%c0_97, %c2_98] : memref<16x22xf32, #tpu.memory_space<vmem>>, vector<16x16xf32>
    %c0_99 = arith.constant 0 : index
    %c3_100 = arith.constant 3 : index
    %144 = vector.load %arg20[%c0_99, %c3_100] : memref<16x22xf32, #tpu.memory_space<vmem>>, vector<16x16xf32>
    %c0_101 = arith.constant 0 : index
    %c4_102 = arith.constant 4 : index
    %145 = vector.load %arg20[%c0_101, %c4_102] : memref<16x22xf32, #tpu.memory_space<vmem>>, vector<16x16xf32>
    %c0_103 = arith.constant 0 : index
    %c5_104 = arith.constant 5 : index
    %146 = vector.load %arg20[%c0_103, %c5_104] : memref<16x22xf32, #tpu.memory_space<vmem>>, vector<16x16xf32>
    %c0_105 = arith.constant 0 : index
    %c6_106 = arith.constant 6 : index
    %147 = vector.load %arg20[%c0_105, %c6_106] : memref<16x22xf32, #tpu.memory_space<vmem>>, vector<16x16xf32>
    %148 = tpu.concatenate %141, %142, %143, %144, %145, %146, %147 in 0 : vector<16x16xf32>, vector<16x16xf32>, vector<16x16xf32>, vector<16x16xf32>, vector<16x16xf32>, vector<16x16xf32>, vector<16x16xf32> -> vector<112x16xf32>
    %c0_107 = arith.constant 0 : index
    %c0_108 = arith.constant 0 : index
    %149 = vector.load %arg15[%c0_107, %c0_108] : memref<16x112xf32, #tpu.memory_space<vmem>>, vector<16x112xf32>
    %cst_109 = arith.constant dense<0.000000e+00> : vector<16x16xf32>
    %150 = tpu.matmul %149, %148, %cst_109 {dimension_numbers = #tpu.dot_dimension_numbers<[1], [0], [0], [1], [0, 0, 1, 1], [], []>} : vector<16x112xf32>, vector<112x16xf32>, vector<16x16xf32> -> vector<16x16xf32>
    %c0_110 = arith.constant 0 : index
    %c0_111 = arith.constant 0 : index
    %151 = vector.load %arg16[%c0_110, %c0_111] : memref<16x1xf32, #tpu.memory_space<vmem>>, vector<16x1xf32>
    %152 = vector.broadcast %151 : vector<16x1xf32> to vector<16x16xf32>
    %153 = arith.mulf %150, %152 : vector<16x16xf32>
    %c0_112 = arith.constant 0 : index
    %c0_113 = arith.constant 0 : index
    %154 = vector.load %arg17[%c0_112, %c0_113] : memref<16x1xf32, #tpu.memory_space<vmem>>, vector<16x1xf32>
    %155 = vector.broadcast %154 : vector<16x1xf32> to vector<16x16xf32>
    %156 = arith.addf %153, %155 : vector<16x16xf32>
    %cst_114 = arith.constant 0.000000e+00 : f32
    %157 = vector.broadcast %cst_114 : f32 to vector<16x16xf32>
    %158 = arith.maximumf %156, %157 : vector<16x16xf32>
    %c0_115 = arith.constant 0 : index
    %c0_116 = arith.constant 0 : index
    %c0_117 = arith.constant 0 : index
    %159 = vector.load %arg18[%c0_115, %c0_116, %c0_117] : memref<1x16x16xf32, #tpu.memory_space<vmem>>, vector<1x16x16xf32>
    %160 = vector.shape_cast %159 : vector<1x16x16xf32> to vector<16x16xf32>
    %161 = vector.shape_cast %158 : vector<16x16xf32> to vector<1x16x16xf32>
    tpu.vector_store %arg18[%c0_115, %c0_116, %c0_117], %161 {strides = array<i32>} : memref<1x16x16xf32, #tpu.memory_space<vmem>>, vector<1x16x16xf32>,
    return
  }
  func.func @transform_0(%arg0: i32) -> (i32, i32, i32) {
    %c0_i32 = arith.constant 0 : i32
    %c0_i32_0 = arith.constant 0 : i32
    %c0_i32_1 = arith.constant 0 : i32
    return %arg0, %c0_i32, %c0_i32_0 : i32, i32, i32
  }
  func.func @transform_1(%arg0: i32) -> (i32, i32) {
    %c0_i32 = arith.constant 0 : i32
    %c0_i32_0 = arith.constant 0 : i32
    %c0_i32_1 = arith.constant 0 : i32
    return %c0_i32, %c0_i32_0 : i32, i32
  }
  func.func @transform_2(%arg0: i32) -> (i32, i32) {
    %c0_i32 = arith.constant 0 : i32
    %c0_i32_0 = arith.constant 0 : i32
    %c0_i32_1 = arith.constant 0 : i32
    return %c0_i32, %c0_i32_0 : i32, i32
  }
  func.func @transform_3(%arg0: i32) -> (i32, i32) {
    %c0_i32 = arith.constant 0 : i32
    %c0_i32_0 = arith.constant 0 : i32
    %c0_i32_1 = arith.constant 0 : i32
    return %c0_i32, %c0_i32_0 : i32, i32
  }
  func.func @transform_4(%arg0: i32) -> (i32, i32) {
    %c0_i32 = arith.constant 0 : i32
    %c0_i32_0 = arith.constant 0 : i32
    %c0_i32_1 = arith.constant 0 : i32
    return %c0_i32, %c0_i32_0 : i32, i32
  }
  func.func @transform_5(%arg0: i32) -> (i32, i32) {
    %c0_i32 = arith.constant 0 : i32
    %c0_i32_0 = arith.constant 0 : i32
    %c0_i32_1 = arith.constant 0 : i32
    return %c0_i32, %c0_i32_0 : i32, i32
  }
  func.func @transform_6(%arg0: i32) -> (i32, i32) {
    %c0_i32 = arith.constant 0 : i32
    %c0_i32_0 = arith.constant 0 : i32
    %c0_i32_1 = arith.constant 0 : i32
    return %c0_i32, %c0_i32_0 : i32, i32
  }
  func.func @transform_7(%arg0: i32) -> (i32, i32) {
    %c0_i32 = arith.constant 0 : i32
    %c0_i32_0 = arith.constant 0 : i32
    %c0_i32_1 = arith.constant 0 : i32
    return %c0_i32, %c0_i32_0 : i32, i32
  }
  func.func @transform_8(%arg0: i32) -> (i32, i32) {
    %c0_i32 = arith.constant 0 : i32
    %c0_i32_0 = arith.constant 0 : i32
    %c0_i32_1 = arith.constant 0 : i32
    return %c0_i32, %c0_i32_0 : i32, i32
  }
  func.func @transform_9(%arg0: i32) -> (i32, i32, i32) {
    %c0_i32 = arith.constant 0 : i32
    %c0_i32_0 = arith.constant 0 : i32
    %c0_i32_1 = arith.constant 0 : i32
    %c0_i32_2 = arith.constant 0 : i32
    return %c0_i32, %c0_i32_0, %c0_i32_1 : i32, i32, i32
  }
  func.func @transform_10(%arg0: i32) -> (i32, i32) {
    %c0_i32 = arith.constant 0 : i32
    %c0_i32_0 = arith.constant 0 : i32
    %c0_i32_1 = arith.constant 0 : i32
    return %c0_i32, %c0_i32_0 : i32, i32
  }
  func.func @transform_11(%arg0: i32) -> (i32, i32) {
    %c0_i32 = arith.constant 0 : i32
    %c0_i32_0 = arith.constant 0 : i32
    %c0_i32_1 = arith.constant 0 : i32
    return %c0_i32, %c0_i32_0 : i32, i32
  }
  func.func @transform_12(%arg0: i32) -> (i32, i32) {
    %c0_i32 = arith.constant 0 : i32
    %c0_i32_0 = arith.constant 0 : i32
    %c0_i32_1 = arith.constant 0 : i32
    return %c0_i32, %c0_i32_0 : i32, i32
  }
  func.func @transform_13(%arg0: i32) -> (i32, i32) {
    %c0_i32 = arith.constant 0 : i32
    %c0_i32_0 = arith.constant 0 : i32
    %c0_i32_1 = arith.constant 0 : i32
    return %c0_i32, %c0_i32_0 : i32, i32
  }
  func.func @transform_14(%arg0: i32) -> (i32, i32) {
    %c0_i32 = arith.constant 0 : i32
    %c0_i32_0 = arith.constant 0 : i32
    %c0_i32_1 = arith.constant 0 : i32
    return %c0_i32, %c0_i32_0 : i32, i32
  }
  func.func @transform_15(%arg0: i32) -> (i32, i32) {
    %c0_i32 = arith.constant 0 : i32
    %c0_i32_0 = arith.constant 0 : i32
    %c0_i32_1 = arith.constant 0 : i32
    return %c0_i32, %c0_i32_0 : i32, i32
  }
  func.func @transform_16(%arg0: i32) -> (i32, i32) {
    %c0_i32 = arith.constant 0 : i32
    %c0_i32_0 = arith.constant 0 : i32
    %c0_i32_1 = arith.constant 0 : i32
    return %c0_i32, %c0_i32_0 : i32, i32
  }
  func.func @transform_17(%arg0: i32) -> (i32, i32, i32) {
    %c0_i32 = arith.constant 0 : i32
    %c0_i32_0 = arith.constant 0 : i32
    %c0_i32_1 = arith.constant 0 : i32
    return %arg0, %c0_i32, %c0_i32_0 : i32, i32, i32
  }
}

</mosaic_0001>

<bundles_post_ra>
// kernel: down_forward.1
= control target key start
LH: loop header
LB: loop body
LE: loop exit
PB: predicated region body
PF: predicated region fallthrough
CT: control target
= control target key end

     0   :  { %s3282_s0 = inlined_call_operand.vmem [shape: f32[2,8,64], index: 0, kind: input, shape index: {}]   ;;  %s3283_s1 = inlined_call_operand.vmem [shape: f32[64,128], index: 1, kind: input, shape index: {}]   ;;  %s3284_s2 = inlined_call_operand.vmem [shape: f32[1,128], index: 2, kind: input, shape index: {}]   ;;  %s3285_s3 = inlined_call_operand.vmem [shape: f32[128,64], index: 3, kind: input, shape index: {}]   ;;  %s3286_s4 = inlined_call_operand.vmem [shape: f32[1,64], index: 4, kind: input, shape index: {}]   ;;  %s3287_s5 = inlined_call_operand.vmem [shape: f32[64,16], index: 5, kind: input, shape index: {}]   ;;  %s3288_s6 = inlined_call_operand.vmem [shape: f32[1,16], index: 6, kind: input, shape index: {}]   ;;  %s3289_s7 = inlined_call_operand.vmem [shape: f32[16,48], index: 7, kind: input, shape index: {}]   ;;  %s3290_s8 = inlined_call_operand.vmem [shape: f32[1,48], index: 8, kind: input, shape index: {}]   ;;  %s3291_s9 = inlined_call_operand.vmem [shape: f32[4,4,16], index: 9, kind: input, shape index: {}]   ;;  %s3292_s10 = inlined_call_operand.vmem [shape: f32[1,16], index: 10, kind: input, shape index: {}]   ;;  %s3293_s11 = inlined_call_operand.vmem [shape: f32[16,56], index: 11, kind: input, shape index: {}]   ;;  %s3294_s12 = inlined_call_operand.vmem [shape: f32[16,1], index: 12, kind: input, shape index: {}]   ;;  %s3295_s13 = inlined_call_operand.vmem [shape: f32[16,1], index: 13, kind: input, shape index: {}]   ;;  %s3296_s14 = inlined_call_operand.vmem [shape: f32[16,112], index: 14, kind: input, shape index: {}]   ;;  %s3297_s15 = inlined_call_operand.vmem [shape: f32[16,1], index: 15, kind: input, shape index: {}]   ;;  %s3298_s16 = inlined_call_operand.vmem [shape: f32[16,1], index: 16, kind: input, shape index: {}]   ;;  %s3299_s17 = inlined_call_operand.hbm [shape: f32[2,16,16], index: 17, kind: output, shape index: {}]  }
   0x1   :  { %3311 = sst [smem:[#allocation13_spill]] %s3282_s0 }
   0x2   :  { %3312 = sst [smem:[#allocation14_spill]] %s3283_s1 }
   0x3   :  { %3313 = sst [smem:[#allocation15_spill]] %s3284_s2 }
   0x4   :  { %22 = vsyncpa [#allocation5], 0 }
   0x5   :  { %24 = vsyncpa [#allocation5 + $0x1], 0  ;;  %s2853_s24 = smov 0   ;;  %s2855_s25 = smov 0  }
   0x6   :  { %s2857_s26 = smov 0   ;;  %s2859_s27 = smov 0  }
   0x7 LB: > { %3314 = sst [smem:[#allocation7_spill]] %s2726_s24  ;;  %s2874_s28 = sadd.s32 4294967295, %s2738_s27   ;;  %s2738_s27 = sphi %s2859_s27, %s3330_s27   ;;  %s2734_s26 = sphi %s2857_s26, %s3332_s26   ;;  %s2730_s25 = sphi %s2855_s25, %s3334_s25   ;;  %s2726_s24 = sphi %s2853_s24, %s3333_s24  }
   0x8   : > { %3315 = sst [smem:[#allocation8_spill]] %s2734_s26  ;;  %s2277_s29 = sadd.s32 4294967294, %s2738_s27  }
   0x9   : > { %3316 = sst [smem:[#allocation9_spill]] %s2738_s27  ;;  %s2878_s0 = sadd.s32 1, %s2738_s27  }
   0xa   : > { %3317 = sst [smem:[#allocation10_spill]] %s2878_s0  ;;  %s399_s30 = sadd.s32 1, %s2734_s26 }
   0xb   : > { %s396_s18 = ssub.s32 %s2738_s27, %s2878_s0  ;;  %p409_p0 = scmp.ne.s32.totalorder %s2734_s26, %s2730_s25 }
   0xc   : > { %p397_p1 = scmp.eq.s32.totalorder %s396_s18, 0  ;;  %p410_p2 = scmp.eq.s32.totalorder %s2874_s28, 1 }
   0xd   : > { %p415_p3 = scmp.ne.s32.totalorder %s2730_s25, %s2726_s24  ;;  %p416_p4 = scmp.eq.s32.totalorder %s2277_s29, 1 }
   0xe   : > { %s2889_s19 = scalar_select %p397_p1, %s2734_s26, %s399_s30  }
   0xf   : > { %p2891_p5 = por %p410_p2, %p409_p0  ;;  %p2895_p6 = por %p416_p4, %p415_p3 }
  0x10   : > { %3318 = sst [smem:[#allocation11_spill]] %s2889_s19  ;;  %p2280_p7 = scmp.ge.s32.totalorder %s2738_s27, 1 }
  0x11   : > { %s3320_s20 = scalar_select %p2895_p6, 1, 0 }
  0x12   : > { %p489_p8 = scmp.lt.s32.totalorder %s2738_s27, 3 }
  0x13   : > { %3321 = sst [smem:[#allocation12_spill]] %s3320_s20 }
  0x14   : > { %p490_p9 = pnand %p2280_p7, %p489_p8 }
  0x15   : > { %s3322_s23 = sld [smem:[#allocation14_spill]] (!%p490_p9)  ;;  %p540_p10 = scmp.lt.s32.totalorder (!%p490_p9), %s2874_s28, 1 }
  0x16   : > { %493 = sbr.rel (%p490_p9) target bundleno = 4507 (0x119b), region = 88  ;;  %s3323_s24 = sld [smem:[#allocation13_spill]] (!%p490_p9) }
  0x17   : > { %s3324_s2 = sld [smem:[#allocation15_spill]] (!%p490_p9)  ;;  %s2743_s30 = smov (!%p490_p9), 112  }
  0x18   : > { %s3307_s20 = smov (!%p490_p9), 124   ;;  %s2746_s18 = smov (!%p490_p9), 92  }
  0x19   : > { %s2747_s21 = smov (!%p490_p9), 104   ;;  %s2748_s19 = smov (!%p490_p9), 120  }
  0x1a   : > { %s3309_s29 = smov (!%p490_p9), 125  }
  0x1b   : > { %v552_v0 = vld [vmem:[%s3322_s23 + $0x38] sm:$0xff]  ;;  %v2740_v1 = vmov 0.0   ;;  %v551_v2 = vld [vmem:[%s3322_s23 + $0x30] sm:$0xff]  ;;  %vm2741_vm0 = vmmov 0   ;;  %v550_v4 = vld [vmem:[%s3322_s23 + $0x28] sm:$0xff]  ;;  %s541_s26 = scalar_select %p540_p10, %s2874_s28, 1 }
  0x1c   : > { %2411 = vmatprep.subr.mxu0 %v2740_v1  ;;  %2427 = vmatprep.mubr.msk.f32.mxu0 %vm2741_vm0, %v2740_v1  ;;  %v650_v3 = vld [vmem:[%s3285_s3 + $0x78] sm:$0xff]  ;;  %v649_v5 = vld [vmem:[%s3285_s3 + $0x70] sm:$0xff]  ;;  %v648_v6 = vld [vmem:[%s3285_s3 + $0x68] sm:$0xff]  ;;  %vm560_vm1 = vcmask 523264   ;;  %vm826_vm2 = vcmask 130048   ;;  %vm903_vm3 = vcmask 31744  }
  0x1d   : > { %2412 = vmatpush3.msra.mxu0 %v552_v0  ;;  %2430 = vmatprep.subr.mxu1 %v2740_v1  ;;  %v549_v7 = vld [vmem:[%s3322_s23 + $0x20] sm:$0xff]  ;;  %v548_v9 = vld [vmem:[%s3322_s23 + $0x18] sm:$0xff]  ;;  %s2282_s0 = sshll.u32 %s541_s26, 3  ;;  %v547_v11 = vld [vmem:[%s3322_s23 + $0x10] sm:$0xff]  ;;  %s2742_s26 = smov 96   ;;  %vm979_vm4 = vcmask 64512  }
  0x1e   : > { %2413 = vmatprep.subr.mxu0 %v2740_v1  ;;  %2431 = vmatpush3.msra.mxu1 %v650_v3  ;;  %v647_v8 = vld [vmem:[%s3285_s3 + $0x60] sm:$0xff]  ;;  %v646_v10 = vld [vmem:[%s3285_s3 + $0x58] sm:$0xff]  ;;  %v645_v12 = vld [vmem:[%s3285_s3 + $0x50] sm:$0xff]  ;;  %s543_s27 = scalar_lea.vmem %s3323_s24, %s2282_s0  ;;  %vm1239_vm5 = vcmask 1043456   ;;  %vm1887_vm6 = vcmask 23552   ;;  %vm1889_vm7 = vcmask 179352  }
  0x1f   : > { %2414 = vmatpush3.msra.mxu0 %v551_v2  ;;  %2432 = vmatprep.subr.mxu1 %v2740_v1  ;;  %v546_v13 = vld [vmem:[%s3322_s23 + $0x8] sm:$0xff]  ;;  %v545_v15 = vld [vmem:[%s3322_s23] sm:$0xff]  ;;  %v642_v18 = vld [vmem:[%s3285_s3 + $0x38] sm:$0xff]  ;;  %1888 = vst.msk [vmem:[#allocation2] sm:$0xff] %vm1887_vm6, %v2740_v1  ;;  %vm1895_vm8 = vcmask 154648   ;;  %vm1919_vm9 = vcmask 457728  }
  0x20   : > { %2415 = vmatprep.subr.mxu0 %v2740_v1  ;;  %2433 = vmatpush3.msra.mxu1 %v649_v5  ;;  %v644_v14 = vld [vmem:[%s3285_s3 + $0x48] sm:$0xff]  ;;  %v544_v16 = vld [vmem:[%s543_s27] sm:$0xff]  ;;  %v641_v19 = vld [vmem:[%s3285_s3 + $0x30] sm:$0xff]  ;;  %s2744_s27 = smov 108   ;;  %2031 = vst.msk [vmem:[#allocation3] sm:$0xff] %vm1887_vm6, %v2740_v1  ;;  %s3325_s24 = smov 124  }
  0x21   : > { %2416 = vmatpush3.msra.mxu0 %v550_v4  ;;  %2434 = vmatprep.subr.mxu1 %v2740_v1  ;;  %v643_v17 = vld [vmem:[%s3285_s3 + $0x40] sm:$0xff]  ;;  %v640_v20 = vld [vmem:[%s3285_s3 + $0x28] sm:$0xff]  ;;  %v638_v22 = vld [vmem:[%s3285_s3 + $0x18] sm:$0xff]  ;;  %2032 = vst.msk [vmem:[#allocation3 + $0x8] sm:$0xff] %vm1887_vm6, %v2740_v1  ;;  %vm2087_vm10 = vcmask 916480  }
  0x22   : > { %2417 = vmatprep.subr.mxu0 %v2740_v1  ;;  %2435 = vmatpush3.msra.mxu1 %v648_v6  ;;  %v639_v21 = vld [vmem:[%s3285_s3 + $0x20] sm:$0xff]  ;;  %v637_v23 = vld [vmem:[%s3285_s3 + $0x10] sm:$0xff]  ;;  %v636_v24 = vld [vmem:[%s3285_s3 + $0x8] sm:$0xff]  ;;  %1890 = vst.msk [vmem:[#allocation2] sm:$0xff] %vm1889_vm7, %v2740_v1 }
  0x23   : > { %2418 = vmatpush3.msra.mxu0 %v549_v7  ;;  %2436 = vmatprep.subr.mxu1 %v2740_v1  ;;  %v635_v25 = vld [vmem:[%s3285_s3] sm:$0xff]  ;;  %v736_v26 = vld [vmem:[%s3287_s5 + $0x38] sm:$0xff]  ;;  %v735_v27 = vld [vmem:[%s3287_s5 + $0x30] sm:$0xff]  ;;  %2033 = vst.msk [vmem:[#allocation3] sm:$0xff] %vm1889_vm7, %v2740_v1 }
  0x24   : > { %2419 = vmatprep.subr.mxu0 %v2740_v1  ;;  %2437 = vmatpush3.msra.mxu1 %v647_v8  ;;  %v734_v28 = vld [vmem:[%s3287_s5 + $0x28] sm:$0xff]  ;;  %v733_v29 = vld [vmem:[%s3287_s5 + $0x20] sm:$0xff]  ;;  %v732_v30 = vld [vmem:[%s3287_s5 + $0x18] sm:$0xff]  ;;  %2034 = vst.msk [vmem:[#allocation3 + $0x8] sm:$0xff] %vm1889_vm7, %v2740_v1 }
  0x25   : > { %2420 = vmatpush3.msra.mxu0 %v548_v9  ;;  %2438 = vmatprep.subr.mxu1 %v2740_v1  ;;  %v2283_v31 = vld [vmem:[%s3324_s2] ss:$0 sm:$0xff]  ;;  %v731_v36 = vld [vmem:[%s3287_s5 + $0x10] sm:$0xff]  ;;  %v730_v37 = vld [vmem:[%s3287_s5 + $0x8] sm:$0xff] }
  0x26   : > { %2421 = vmatprep.subr.mxu0 %v2740_v1  ;;  %2439 = vmatpush3.msra.mxu1 %v646_v10  ;;  %v729_v38 = vld [vmem:[%s3287_s5] sm:$0xff]  ;;  %v818_v44 = vld [vmem:[%s3289_s7 + $0x8] sm:$0xff] }
  0x27   : > { %2422 = vmatpush3.msra.mxu0 %v547_v11  ;;  %2440 = vmatprep.subr.mxu1 %v2740_v1  ;;  %v2285_v39 = vld [vmem:[%s3286_s4] ss:$0 sm:$0xff] }
  0x28   : > { %2423 = vmatprep.subr.mxu0 %v2740_v1  ;;  %2441 = vmatpush3.msra.mxu1 %v645_v12  ;;  %v817_v45 = vld [vmem:[%s3289_s7] sm:$0xff] }
  0x29   : > { %2424 = vmatpush3.msra.mxu0 %v546_v13  ;;  %2442 = vmatprep.subr.mxu1 %v2740_v1  ;;  %v2286_v46 = vld [vmem:[%s3288_s6] ss:$0 sm:$0xff] }
  0x2a   : > { %2425 = vmatprep.subr.mxu0 %v2740_v1  ;;  %2443 = vmatpush3.msra.mxu1 %v644_v14  ;;  %v2288_v50 = vld [vmem:[%s3290_s8] ss:$0 sm:$0xff] }
  0x2b   : > { %2426 = vmatpush3.msra.mxu0 %v545_v15  ;;  %2444 = vmatprep.subr.mxu1 %v2740_v1 }
  0x2c   : > { %2428 = vmatmul.mubr.msk.f32.vlgmr.msra.gmra.mxu0 %vm560_vm1, %v544_v16  ;;  %2445 = vmatpush3.msra.mxu1 %v643_v17 }
  0x2d   : > { %2446 = vmatprep.subr.mxu1 %v2740_v1  ;;  %2462 = vmatprep.mubr.msk.f32.mxu1 %vm2741_vm0, %v2740_v1 }
  0x2e   : > { %2447 = vmatpush3.msra.mxu1 %v642_v18  ;;  %2465 = vmatprep.subr.mxu0 %v2740_v1  ;;  %v2296_v18 = vld [vmem:[%s3291_s9 + $0x4] sm:$0xf] }
  0x2f   : > { %2448 = vmatprep.subr.mxu1 %v2740_v1  ;;  %2481 = vmatprep.mubr.msk.f32.mxu0 %vm2741_vm0, %v2740_v1 }
  0x30   : > { %2449 = vmatpush3.msra.mxu1 %v641_v19  ;;  %2466 = vmatpush3.msra.mxu0 %v736_v26 }
  0x31   : > { %2450 = vmatprep.subr.mxu1 %v2740_v1  ;;  %2467 = vmatprep.subr.mxu0 %v2740_v1 }
  0x32   : > { %2451 = vmatpush3.msra.mxu1 %v640_v20  ;;  %2468 = vmatpush3.msra.mxu0 %v735_v27 }
  0x33   : > { %2452 = vmatprep.subr.mxu1 %v2740_v1  ;;  %2469 = vmatprep.subr.mxu0 %v2740_v1 }
  0x34   : > { %2453 = vmatpush3.msra.mxu1 %v639_v21  ;;  %2470 = vmatpush3.msra.mxu0 %v734_v28 }
  0x35   : > { %2454 = vmatprep.subr.mxu1 %v2740_v1  ;;  %2471 = vmatprep.subr.mxu0 %v2740_v1 }
  0x36   : > { %2455 = vmatpush3.msra.mxu1 %v638_v22  ;;  %2472 = vmatpush3.msra.mxu0 %v733_v29 }
  0x37   : > { %2456 = vmatprep.subr.mxu1 %v2740_v1  ;;  %2473 = vmatprep.subr.mxu0 %v2740_v1 }
  0x38   : > { %2457 = vmatpush3.msra.mxu1 %v637_v23  ;;  %2474 = vmatpush3.msra.mxu0 %v732_v30  ;;  %v1067_v23 = vld [vmem:[%s3291_s9] sm:$0xf] }
  0x39   : > { %2458 = vmatprep.subr.mxu1 %v2740_v1  ;;  %2475 = vmatprep.subr.mxu0 %v2740_v1 }
  0x3a   : > { %2459 = vmatpush3.msra.mxu1 %v636_v24  ;;  %2476 = vmatpush3.msra.mxu0 %v731_v36 }
  0x3b   : > { %2460 = vmatprep.subr.mxu1 %v2740_v1  ;;  %2477 = vmatprep.subr.mxu0 %v2740_v1 }
  0x3c   : > { %2461 = vmatpush3.msra.mxu1 %v635_v25  ;;  %2478 = vmatpush3.msra.mxu0 %v730_v37 }
  0x3d   : > { %2484 = vmatprep.subr.mxu1 %v2740_v1  ;;  %2479 = vmatprep.subr.mxu0 %v2740_v1 }
  0x3e   : > { %2480 = vmatpush3.msra.mxu0 %v729_v38 }
  0x3f   : > { %2506 = vmatprep.subr.mxu0 %v2740_v1 }
  0xec   : > { %v630_v32 = vpop.f32.mrf.mxu0 }
  0xed   : > { %v631_v33 = vadd.f32 %v2283_v31, %v630_v32 }
  0xee   : > { %v2429_v34 = vpop.f32.mrf.mxu0 }
  0xef   : > { %v634_v35 = vmax.f32 %v631_v33, 0.0 }
  0xf1   : > { %2463 = vmatmul.mubr.f32.vlgmr.msra.gmra.mxu1 %v634_v35 }
  0xf2   : > { %2488 = vmatprep.mubr.msk.f32.mxu1 %vm2741_vm0, %v2740_v1  ;;  %2485 = vmatpush3.msra.mxu1 %v818_v44 }
  0xf3   : > { %2486 = vmatprep.subr.mxu1 %v2740_v1 }
  0xf4   : > { %2487 = vmatpush3.msra.mxu1 %v817_v45 }
  0xf5   : > { %2491 = vmatprep.subr.mxu1 %v2740_v1 }
 0x1b1   : > { %v724_v40 = vpop.f32.mrf.mxu1 }
 0x1b2   : > { %v725_v41 = vadd.f32 %v2285_v39, %v724_v40 }
 0x1b3   : > { %v2464_v42 = vpop.f32.mrf.mxu1 }
 0x1b4   : > { %v728_v43 = vmax.f32 %v725_v41, 0.0 }
 0x1b6   : > { %2482 = vmatmul.mubr.msk.f32.vlgmr.msra.gmra.mxu0 %vm560_vm1, %v728_v43 }
 0x1b7   : > { %2508 = vmatprep.mubr.msk.f32.mxu0 %vm2741_vm0, %v2740_v1 }
 0x276   : > { %v813_v47 = vpop.f32.mrf.mxu0 }
 0x277   : > { %v814_v48 = vadd.f32 %v2286_v46, %v813_v47  ;;  %v2304_v47 = vld [vmem:[%s3291_s9 + $0x8] sm:$0xf] }
 0x278   : > { %v2483_v49 = vpop.f32.mrf.mxu0 }
 0x279   : > { %2489 = vmatmul.mubr.msk.f32.vlgmr.msra.gmra.mxu1 %vm826_vm2, %v814_v48 }
 0x27a   : > { %2493 = vmatprep.mubr.msk.f32.mxu1 %vm2741_vm0, %v2740_v1 }
 0x339   : > { %v896_v51 = vpop.f32.mrf.mxu1 }
 0x33a   : > { %v3073_v52 = vadd.f32 %v2288_v50, %v896_v51 }
 0x33b   : > { %v2490_v53 = vpop.f32.mrf.mxu1 }
 0x33c   : > { %991 = vrot.lane.b32.xlu1 %v3073_v52, %s2742_s26  ;;  %901 = vrot.lane.b32.xlu0 %v3073_v52, %s2743_s30  ;;  %s2749_s26 = smov 88   ;;  %s2750_s30 = smov 100  }
 0x340   : > { %1070 = vrot.lane.b32.xlu1 %v3073_v52, %s2744_s27  ;;  %s2751_s27 = smov 116  }
 0x3ae   : > { %v902_v54 = vpop.permute.xlu0 %901  ;;  %v992_v55 = vpop.permute.xlu1 %991 }
 0x3af   : > { %2492 = vmatpush3.xpose.msk.msra.mxu1 %vm903_vm3, %v902_v54 }
 0x3b0   : > { %2496 = vmatprep.subr.mxu1 %v2740_v1 }
 0x3b2   : > { %2494 = vmatmul.mubr.msk.f32.vlgmr.msra.gmra.mxu1 %vm903_vm3, %v3073_v52  ;;  %v1071_v2 = vpop.permute.xlu1 %1070 }
 0x3b3   : > { %2497 = vmatpush3.msra.mxu1 %v992_v55  ;;  %2498 = vmatprep.mubr.msk.f32.mxu1 %vm2741_vm0, %v2740_v1 }
 0x3b4   : > { %2501 = vmatprep.subr.mxu1 %v2740_v1 }
 0x472   : > { %v974_v56 = vpop.f32.mrf.mxu1 }
 0x473   : > { %v978_v57 = vmul.f32 0.5, %v974_v56 }
 0x474   : > { %v2495_v58 = vpop.f32.mrf.mxu1 }
 0x475   : > { %v980_v59 = vsel %vm979_vm4, %v978_v57, -inf }
 0x476   : > { %981 = vmax.xlane.f32.xlu0 %v980_v59 }
 0x4ff   : > { %v982_v60 = vpop.xlane.xlu0 %981 }
 0x500   : > { %v983_v61 = vsub.f32 %v978_v57, %v982_v60  ;;  %v2310_v60 = vld [vmem:[%s3291_s9 + $0xc] sm:$0xf] }
 0x502   : > { %v984_v62 = vmul.f32 1.442695, %v983_v61 }
 0x504   : > { %2662 = vpow2.f32 %v984_v62 }
 0x511   : > { %v2663_v63 = vpop.eup %2662 }
 0x512   : > { %v986_v0 = vsel %vm979_vm4, %v2663_v63, 0.0 }
 0x513   : > { %987 = vadd.xlane.f32.xlu1 %v986_v0 }
 0x524   : > { %1068 = vrot.lane.b32.xlu1 %v3073_v52, %s3307_s20 }
 0x59c   : > { %v988_v3 = vpop.xlane.xlu1 %987 }
 0x59d   : > { %2664 = vrcp.f32 %v988_v3 }
 0x5a0   : > { %v1069_v6 = vpop.permute.xlu1 %1068 }
 0x5aa   : > { %v2665_v4 = vpop.eup %2664 }
 0x5ab   : > { %v990_v5 = vmul.f32 %v2665_v4, %v2663_v63 }
 0x5ad   : > { %2499 = vmatmul.mubr.msk.f32.vlgmr.msra.gmra.mxu1 %vm979_vm4, %v990_v5 }
 0x5ae   : > { %2502 = vmatpush3.xpose.msk.msra.mxu1 %vm903_vm3, %v1071_v2  ;;  %2503 = vmatprep.mubr.msk.f32.mxu1 %vm2741_vm0, %v2740_v1 }
 0x5af   : > { %2511 = vmatprep.subr.mxu1 %v2740_v1 }
 0x5b1   : > { %2504 = vmatmul.mubr.msk.f32.vlgmr.msra.gmra.mxu1 %vm903_vm3, %v1069_v6 }
 0x5b2   : > { %2513 = vmatprep.mubr.msk.f32.mxu1 %vm2741_vm0, %v2740_v1  ;;  %2512 = vmatpush3.msk.msra.mxu1 %vm1239_vm5, %v2296_v18  ;;  %v2001_v18 = vld [vmem:[%s3294_s12] sm:$0xff] }
 0x5b3   : > { %2521 = vmatprep.subr.mxu1 %v2740_v1 }
 0x66d   : > { %v1063_v7 = vpop.f32.mrf.mxu1 }
 0x66f   : > { %v2500_v8 = vpop.f32.mrf.mxu1 }
 0x670   : > { %v2313_v8 = vld [vmem:[%s3292_s10] ss:$0 sm:$0xff] }
 0x671   : > { %v1142_v9 = vpop.f32.mrf.mxu1 }
 0x672   : > { %v1146_v10 = vmul.f32 0.5, %v1142_v9 }
 0x673   : > { %v2505_v11 = vpop.f32.mrf.mxu1 }
 0x674   : > { %v1147_v12 = vsel %vm979_vm4, %v1146_v10, -inf }
 0x675   : > { %1148 = vmax.xlane.f32.xlu1 %v1147_v12 }
 0x6fe   : > { %v1149_v13 = vpop.xlane.xlu1 %1148 }
 0x6ff   : > { %v1150_v14 = vsub.f32 %v1146_v10, %v1149_v13 }
 0x701   : > { %v1151_v15 = vmul.f32 1.442695, %v1150_v14  ;;  %v2002_v14 = vld [vmem:[%s3294_s12 + $0x8] sm:$0xff] }
 0x703   : > { %2666 = vpow2.f32 %v1151_v15  ;;  %v2757_v15 = vmov 0  }
 0x704   : > { %2660 = vset.pattern.permute.xlu1 %v2757_v15  ;;  %2661 = vset.pattern.permute.xlu0 %v2757_v15 }
 0x710   : > { %v2667_v16 = vpop.eup %2666 }
 0x711   : > { %v1153_v17 = vsel %vm979_vm4, %v2667_v16, 0.0 }
 0x712   : > { %1154 = vadd.xlane.f32.xlu0 %v1153_v17  ;;  %v2015_v17 = vld [vmem:[%s3295_s13] sm:$0xff] }
 0x728   : > { %1158 = vrot.lane.b32.xlu0 %v3073_v52, %s2746_s18  ;;  %s2758_s18 = smov 126  }
 0x72c   : > { %1391 = vrot.lane.b32.xlu0 %v3073_v52, %s2747_s21  ;;  %s537_s21 = sand.u32 1, %s2730_s25  }
 0x730   : > { %1389 = vrot.lane.b32.xlu0 %v3073_v52, %s2748_s19  ;;  %s2752_s19 = smov 84  }
 0x79b   : > { %v1155_v19 = vpop.xlane.xlu0 %1154 }
 0x79c   : > { %2668 = vrcp.f32 %v1155_v19 }
 0x79f   : > { %v1159_v20 = vpop.permute.xlu0 %1158 }
 0x7a0   : > { %2507 = vmatpush3.msra.mxu0 %v1159_v20 }
 0x7a1   : > { %2516 = vmatprep.subr.mxu0 %v2740_v1 }
 0x7a3   : > { %v1392_v24 = vpop.permute.xlu0 %1391 }
 0x7a7   : > { %v1390_v27 = vpop.permute.xlu0 %1389 }
 0x7a9   : > { %v2669_v21 = vpop.eup %2668 }
 0x7aa   : > { %v1157_v22 = vmul.f32 %v2669_v21, %v2667_v16  ;;  %v2016_v16 = vld [vmem:[%s3295_s13 + $0x8] sm:$0xff] }
 0x7ac   : > { %2509 = vmatmul.mubr.msk.f32.vlgmr.msra.gmra.mxu0 %vm979_vm4, %v1157_v22 }
 0x7ad   : > { %2517 = vmatpush3.msk.msra.mxu0 %vm1239_vm5, %v1067_v23  ;;  %2518 = vmatprep.mubr.msk.f32.mxu0 %vm2741_vm0, %v2740_v1 }
 0x7ae   : > { %2526 = vmatprep.subr.mxu0 %v2740_v1 }
 0x7b0   : > { %2519 = vmatmul.mubr.msk.f32.vlgmr.msra.gmra.mxu0 %vm903_vm3, %v1063_v7 }
 0x7b1   : > { %2528 = vmatprep.mubr.msk.f32.mxu0 %vm2741_vm0, %v2740_v1 }
 0x86c   : > { %v1230_v25 = vpop.f32.mrf.mxu0 }
 0x86d   : > { %2514 = vmatmul.mubr.msk.f32.vlgmr.msra.gmra.mxu1 %vm903_vm3, %v1230_v25  ;;  %v1918_v25 = vld [vmem:[%s3293_s11 + $0x8] sm:$0xff] }
 0x86e   : > { %2522 = vmatpush3.xpose.msk.msra.mxu1 %vm903_vm3, %v1392_v24  ;;  %v2510_v26 = vpop.f32.mrf.mxu0  ;;  %2523 = vmatprep.mubr.msk.f32.mxu1 %vm2741_vm0, %v2740_v1 }
 0x86f   : > { %2531 = vmatprep.subr.mxu1 %v2740_v1 }
 0x870   : > { %v1385_v28 = vpop.f32.mrf.mxu0 }
 0x871   : > { %2524 = vmatmul.mubr.msk.f32.vlgmr.msra.gmra.mxu1 %vm903_vm3, %v1390_v27 }
 0x872   : > { %v2520_v29 = vpop.f32.mrf.mxu0  ;;  %2533 = vmatprep.mubr.msk.f32.mxu1 %vm2741_vm0, %v2740_v1  ;;  %2532 = vmatpush3.msk.msra.mxu1 %vm1239_vm5, %v2304_v47 }
 0x873   : > { %2541 = vmatprep.subr.mxu1 %v2740_v1 }
 0x92d   : > { %v1309_v30 = vpop.f32.mrf.mxu1 }
 0x92e   : > { %v1386_v61 = vadd.f32 %v1385_v28, %v1309_v30 }
 0x92f   : > { %v2515_v31 = vpop.f32.mrf.mxu1 }
 0x931   : > { %v1463_v32 = vpop.f32.mrf.mxu1 }
 0x932   : > { %v1467_v33 = vmul.f32 0.5, %v1463_v32 }
 0x933   : > { %v2525_v34 = vpop.f32.mrf.mxu1 }
 0x934   : > { %v1468_v35 = vsel %vm979_vm4, %v1467_v33, -inf }
 0x935   : > { %1469 = vmax.xlane.f32.xlu1 %v1468_v35 }
 0x946   : > { %1479 = vrot.lane.b32.xlu1 %v3073_v52, %s2749_s26  ;;  %s2753_s26 = smov 3  }
 0x94a   : > { %1636 = vrot.lane.b32.xlu1 %v3073_v52, %s2750_s30  ;;  %s2754_s30 = smov 123  }
 0x94e   : > { %1634 = vrot.lane.b32.xlu1 %v3073_v52, %s2751_s27  ;;  %s2755_s27 = smov 122  }
 0x9be   : > { %v1470_v36 = vpop.xlane.xlu1 %1469 }
 0x9bf   : > { %v1471_v37 = vsub.f32 %v1467_v33, %v1470_v36 }
 0x9c1   : > { %v1472_v38 = vmul.f32 1.442695, %v1471_v37 }
 0x9c2   : > { %v1480_v39 = vpop.permute.xlu1 %1479 }
 0x9c3   : > { %2670 = vpow2.f32 %v1472_v38  ;;  %2527 = vmatpush3.msra.mxu0 %v1480_v39 }
 0x9c4   : > { %2536 = vmatprep.subr.mxu0 %v2740_v1 }
 0x9c6   : > { %v1637_v44 = vpop.permute.xlu1 %1636 }
 0x9ca   : > { %v1635_v46 = vpop.permute.xlu1 %1634 }
 0x9d0   : > { %v2671_v40 = vpop.eup %2670 }
 0x9d1   : > { %v1474_v41 = vsel %vm979_vm4, %v2671_v40, 0.0 }
 0x9d2   : > { %1475 = vadd.xlane.f32.xlu0 %v1474_v41 }
 0xa5b   : > { %v1476_v42 = vpop.xlane.xlu0 %1475 }
 0xa5c   : > { %2672 = vrcp.f32 %v1476_v42  ;;  %v2085_v42 = vld [vmem:[%s3296_s14] sm:$0xff] }
 0xa69   : > { %v2673_v43 = vpop.eup %2672 }
 0xa6a   : > { %v1478_v45 = vmul.f32 %v2673_v43, %v2671_v40  ;;  %v2169_v43 = vld [vmem:[%s3297_s15] sm:$0xff] }
 0xa6c   : > { %2529 = vmatmul.mubr.msk.f32.vlgmr.msra.gmra.mxu0 %vm979_vm4, %v1478_v45  ;;  %v2183_v45 = vld [vmem:[%s3298_s16] sm:$0xff] }
 0xa6d   : > { %2537 = vmatpush3.xpose.msk.msra.mxu0 %vm903_vm3, %v1637_v44  ;;  %2538 = vmatprep.mubr.msk.f32.mxu0 %vm2741_vm0, %v2740_v1  ;;  %v2170_v44 = vld [vmem:[%s3297_s15 + $0x8] sm:$0xff] }
 0xa6e   : > { %2546 = vmatprep.subr.mxu0 %v2740_v1 }
 0xa70   : > { %2539 = vmatmul.mubr.msk.f32.vlgmr.msra.gmra.mxu0 %vm903_vm3, %v1635_v46  ;;  %v2184_v46 = vld [vmem:[%s3298_s16 + $0x8] sm:$0xff] }
 0xa71   : > { %2548 = vmatprep.mubr.msk.f32.mxu0 %vm2741_vm0, %v2740_v1  ;;  %2547 = vmatpush3.msk.msra.mxu0 %vm1239_vm5, %v2310_v60  ;;  %v2086_v60 = vld [vmem:[%s3296_s14 + $0x8] sm:$0xff] }
 0xb2c   : > { %v1551_v48 = vpop.f32.mrf.mxu0 }
 0xb2d   : > { %2534 = vmatmul.mubr.msk.f32.vlgmr.msra.gmra.mxu1 %vm903_vm3, %v1551_v48 }
 0xb2e   : > { %v2530_v49 = vpop.f32.mrf.mxu0  ;;  %2543 = vmatprep.mubr.msk.f32.mxu1 %vm2741_vm0, %v2740_v1  ;;  %v1917_v1 = vld [vmem:[%s3293_s11] sm:$0xff] }
 0xb30   : > { %v1708_v50 = vpop.f32.mrf.mxu0 }
 0xb31   : > { %v1712_v51 = vmul.f32 0.5, %v1708_v50 }
 0xb32   : > { %v2540_v53 = vpop.f32.mrf.mxu0 }
 0xb33   : > { %v1713_v54 = vsel %vm979_vm4, %v1712_v51, -inf }
 0xb34   : > { %1714 = vmax.xlane.f32.xlu1 %v1713_v54 }
 0xbbd   : > { %v1715_v55 = vpop.xlane.xlu1 %1714 }
 0xbbe   : > { %v1716_v56 = vsub.f32 %v1712_v51, %v1715_v55 }
 0xbc0   : > { %v1717_v57 = vmul.f32 1.442695, %v1716_v56 }
 0xbc2   : > { %2674 = vpow2.f32 %v1717_v57 }
 0xbcf   : > { %v2675_v58 = vpop.eup %2674 }
 0xbd0   : > { %v1719_v59 = vsel %vm979_vm4, %v2675_v58, 0.0 }
 0xbd1   : > { %1720 = vadd.xlane.f32.xlu0 %v1719_v59 }
 0xbe7   : > { %1724 = vrot.lane.b32.xlu0 %v3073_v52, %s2752_s19  ;;  %s2759_s19 = smov 127  }
 0xbed   : > { %v1629_v62 = vpop.f32.mrf.mxu1 }
 0xbee   : > { %v1633_v63 = vadd.f32 %v1629_v62, %v1386_v61 }
 0xbef   : > { %v2535_v0 = vpop.f32.mrf.mxu1 }
 0xc5a   : > { %v1721_v2 = vpop.xlane.xlu0 %1720 }
 0xc5b   : > { %2676 = vrcp.f32 %v1721_v2 }
 0xc5e   : > { %v1725_v3 = vpop.permute.xlu0 %1724 }
 0xc5f   : > { %2542 = vmatpush3.msra.mxu1 %v1725_v3 }
 0xc68   : > { %v2677_v4 = vpop.eup %2676 }
 0xc69   : > { %v1723_v5 = vmul.f32 %v2677_v4, %v2675_v58 }
 0xc6b   : > { %2544 = vmatmul.mubr.msk.f32.vlgmr.msra.gmra.mxu1 %vm979_vm4, %v1723_v5 }
 0xc6c   : > { %2565 = vmatprep.mubr.msk.f32.mxu1 %vm1919_vm9, %v1917_v1 }
 0xd2b   : > { %v1796_v6 = vpop.f32.mrf.mxu1 }
 0xd2c   : > { %2549 = vmatmul.mubr.msk.f32.vlgmr.msra.gmra.mxu0 %vm903_vm3, %v1796_v6 }
 0xd2d   : > { %v2545_v52 = vpop.f32.mrf.mxu1  ;;  %2596 = vmatprep.mubr.msk.f32.mxu0 %vm2087_vm10, %v2085_v42 }
 0xdec   : > { %v1874_v7 = vpop.f32.mrf.mxu0 }
 0xded   : > { %v1878_v9 = vadd.f32 %v1874_v7, %v1633_v63 }
 0xdee   : > { %v2550_v10 = vpop.f32.mrf.mxu0 }
 0xdef   : > { %v1886_v11 = vadd.f32 %v2313_v8, %v1878_v9 }
 0xdf1   : > { %1892 = vrot.lane.b32.xlu0 %v1886_v11, %s2753_s26 }
 0xe63   : > { %v1893_v12 = vpop.permute.xlu0 %1892 }
 0xe64   : > { %1896 = vst.msk [vmem:[#allocation2] sm:$0xff] %vm1895_vm8, %v1893_v12 }
 0xe6b   : > { %v1897_v13 = vld [vmem:[#allocation2] sm:$0xff] }
 0xe6c   : > { %1911 = vrot.lane.b32.xlu1 %v1897_v13, %s2754_s30  ;;  %1914 = vrot.lane.b32.xlu0 %v1897_v13, %s2755_s27 }
 0xe70   : > { %1908 = vrot.lane.b32.xlu0 %v1897_v13, %s3307_s20  ;;  %2010 = vperm.xlu1 %2660, %v2002_v14  }
 0xe74   : > { %1905 = vrot.lane.b32.xlu0 %v1897_v13, %s3309_s29  ;;  %2024 = vperm.xlu1 %2660, %v2016_v16  }
 0xe78   : > { %1902 = vrot.lane.b32.xlu0 %v1897_v13, %s2758_s18  ;;  %2019 = vperm.xlu1 %2660, %v2015_v17  }
 0xe7c   : > { %1899 = vrot.lane.b32.xlu0 %v1897_v13, %s2759_s19 }
 0xe80   : > { %2005 = vperm.xlu0 %2661, %v2001_v18  }
 0xede   : > { %v1915_v19 = vpop.permute.xlu0 %1914  ;;  %v1912_v20 = vpop.permute.xlu1 %1911 }
 0xedf   : > { %2551 = vmatprep.subr.mxu1 %v1915_v19 }
 0xee0   : > { %2552 = vmatpush3.msra.mxu1 %v1915_v19 }
 0xee1   : > { %2553 = vmatprep.subr.mxu1 %v1912_v20 }
 0xee2   : > { %2554 = vmatpush3.msra.mxu1 %v1912_v20  ;;  %v1909_v21 = vpop.permute.xlu0 %1908 }
 0xee3   : > { %2555 = vmatprep.subr.mxu1 %v1909_v21 }
 0xee4   : > { %2556 = vmatpush3.msra.mxu1 %v1909_v21 }
 0xee6   : > { %v1906_v22 = vpop.permute.xlu0 %1905 }
 0xee7   : > { %2557 = vmatprep.subr.mxu1 %v1906_v22 }
 0xee8   : > { %2558 = vmatpush3.msra.mxu1 %v1906_v22 }
 0xeea   : > { %v1903_v23 = vpop.permute.xlu0 %1902 }
 0xeeb   : > { %2559 = vmatprep.subr.mxu1 %v1903_v23  ;;  %v2011_v26 = vpop.permute.xlu1 %2010 }
 0xeec   : > { %2560 = vmatpush3.msra.mxu1 %v1903_v23 }
 0xeee   : > { %v1900_v24 = vpop.permute.xlu0 %1899 }
 0xeef   : > { %2561 = vmatprep.subr.mxu1 %v1900_v24  ;;  %v2025_v27 = vpop.permute.xlu1 %2024 }
 0xef0   : > { %2562 = vmatpush3.msra.mxu1 %v1900_v24 }
 0xef1   : > { %2563 = vmatprep.subr.mxu1 %v1897_v13 }
 0xef2   : > { %2564 = vmatpush3.msra.mxu1 %v1897_v13 }
 0xef3   : > { %2566 = vmatmul.mubr.msk.f32.vlgmr.msra.gmra.mxu1 %vm1919_vm9, %v1918_v25  ;;  %v2020_v34 = vpop.permute.xlu1 %2019 }
 0xefb   : > { %v2006_v29 = vpop.permute.xlu0 %2005 }
 0xfb3   : > { %v2567_v28 = vpop.f32.mrf.mxu1 }
 0xfb4   : > { %v2014_v30 = vmul.f32 %v2567_v28, %v2011_v26 }
 0xfb5   : > { %v1992_v31 = vpop.f32.mrf.mxu1 }
 0xfb6   : > { %v2028_v32 = vadd.f32 %v2025_v27, %v2014_v30  ;;  %v2013_v33 = vmul.f32 %v2006_v29, %v1992_v31 }
 0xfb8   : > { %v2030_v35 = vmax.f32 %v2028_v32, 0.0  ;;  %v2027_v36 = vadd.f32 %v2020_v34, %v2013_v33 }
 0xfba   : > { %v2029_v37 = vmax.f32 %v2027_v36, 0.0  ;;  %2039 = vrot.lane.b32.xlu0 %v2030_v35, %s2753_s26 }
 0xfbc   : > { %2037 = vrot.lane.b32.xlu1 %v2029_v37, %s2753_s26  ;;  %s3326_s26 = smov 125  }
0x102c   : > { %v2040_v38 = vpop.permute.xlu0 %2039 }
0x102d   : > { %2044 = vst.msk [vmem:[#allocation3 + $0x8] sm:$0xff] %vm1895_vm8, %v2040_v38 }
0x102e   : > { %v2038_v39 = vpop.permute.xlu1 %2037 }
0x102f   : > { %2043 = vst.msk [vmem:[#allocation3] sm:$0xff] %vm1895_vm8, %v2038_v39 }
0x1034   : > { %v2046_v40 = vld [vmem:[#allocation3 + $0x8] sm:$0xff] }
0x1035   : > { %2081 = vrot.lane.b32.xlu0 %v2046_v40, %s2755_s27 }
0x1036   : > { %v2045_v41 = vld [vmem:[#allocation3] sm:$0xff] }
0x1037   : > { %2079 = vrot.lane.b32.xlu1 %v2045_v41, %s2755_s27  ;;  %s2323_s27 = sshll.u32 %s2874_s28, 8  ;;  %s3242_s28 = scalar_lea.sflag [#allocation5], %s537_s21 }
0x1039   : > { %2075 = vrot.lane.b32.xlu0 %v2046_v40, %s2754_s30 }
0x103b   : > { %2073 = vrot.lane.b32.xlu1 %v2045_v41, %s2754_s30  ;;  %s2281_s30 = sshll.u32 %s537_s21, 4 }
0x103c   : > { %s539_s22 = scalar_lea.vmem [#allocation4], %s2281_s30 }
0x103d   : > { %2069 = vrot.lane.b32.xlu0 %v2046_v40, %s3325_s24  ;;  %s2215_s20 = sshll.u32 %s539_s22, 4  ;;  %s3238_s20 = int_to_ptr.vmem [resolvable:$true] %s2215_s20 }
0x103f   : > { %2067 = vrot.lane.b32.xlu1 %v2045_v41, %s3325_s24 }
0x1041   : > { %2063 = vrot.lane.b32.xlu0 %v2046_v40, %s3326_s26 }
0x1043   : > { %2061 = vrot.lane.b32.xlu1 %v2045_v41, %s3326_s26  ;;  %s3236_s26 = scalar_lea.hbm %s3299_s17, %s2323_s27 }
0x1045   : > { %2057 = vrot.lane.b32.xlu0 %v2046_v40, %s2758_s18 }
0x1047   : > { %2055 = vrot.lane.b32.xlu1 %v2045_v41, %s2758_s18  ;;  %s2678_s18 = scalar_lea.vmem %s3238_s20, 256 }
0x1048   : > { %p2679_p11 = scmp.ne.s32.totalorder %s3238_s20, %s2678_s18 }
0x1049   : > { %2051 = vrot.lane.b32.xlu0 %v2046_v40, %s2759_s19 }
0x104a   : > { %p2680_p12 = pnand %p2679_p11, %p2891_p5 }
0x104b   : > { %2049 = vrot.lane.b32.xlu1 %v2045_v41, %s2759_s19  ;;  %s2760_s19 = smov [#allocation4]  }
0x104c   : > { %p2681_p13 = pneg %p2680_p12  ;;  %s2682_s0 = sshll.u32 %s2760_s19, 4  ;;  %s2683_s0 = int_to_ptr.vmem [resolvable:$false] %s2682_s0 }
0x104d   : > { %2173 = vperm.xlu0 %2661, %v2169_v43   ;;  %s2684_s30 = scalar_lea.vmem %s2683_s0, 512  ;;  %p2685_p0 = scmp.lt.s32.totalorder %s3238_s20, %s2683_s0 }
0x104e   : > { %p2686_p1 = scmp.lt.s32.totalorder %s2684_s30, %s2678_s18 }
0x104f   : > { %2178 = vperm.xlu1 %2660, %v2170_v44  }
0x1050   : > { %p2687_p2 = por %p2686_p1, %p2685_p0 }
0x1051   : > { %2187 = vperm.xlu0 %2661, %v2183_v45  }
0x1052   : > { %p2688_p3 = pnand %p2687_p2, %p2681_p13 }
0x1053   : > { %2192 = vperm.xlu1 %2660, %v2184_v46  }
0x10a7   : > { %v2082_v47 = vpop.permute.xlu0 %2081 }
0x10a8   : > { %2568 = vmatprep.subr.mxu0 %v2082_v47 }
0x10a9   : > { %v2080_v48 = vpop.permute.xlu1 %2079  ;;  %2569 = vmatpush3.msra.mxu0 %v2082_v47 }
0x10aa   : > { %2570 = vmatprep.subr.mxu0 %v2080_v48 }
0x10ab   : > { %2571 = vmatpush3.msra.mxu0 %v2080_v48  ;;  %v2076_v49 = vpop.permute.xlu0 %2075 }
0x10ac   : > { %2572 = vmatprep.subr.mxu0 %v2076_v49 }
0x10ad   : > { %v2074_v50 = vpop.permute.xlu1 %2073  ;;  %2573 = vmatpush3.msra.mxu0 %v2076_v49 }
0x10ae   : > { %2574 = vmatprep.subr.mxu0 %v2074_v50 }
0x10af   : > { %2575 = vmatpush3.msra.mxu0 %v2074_v50  ;;  %v2070_v51 = vpop.permute.xlu0 %2069 }
0x10b0   : > { %2576 = vmatprep.subr.mxu0 %v2070_v51 }
0x10b1   : > { %v2068_v53 = vpop.permute.xlu1 %2067  ;;  %2577 = vmatpush3.msra.mxu0 %v2070_v51 }
0x10b2   : > { %2578 = vmatprep.subr.mxu0 %v2068_v53 }
0x10b3   : > { %2579 = vmatpush3.msra.mxu0 %v2068_v53  ;;  %v2064_v54 = vpop.permute.xlu0 %2063 }
0x10b4   : > { %2580 = vmatprep.subr.mxu0 %v2064_v54 }
0x10b5   : > { %v2062_v55 = vpop.permute.xlu1 %2061  ;;  %2581 = vmatpush3.msra.mxu0 %v2064_v54 }
0x10b6   : > { %2582 = vmatprep.subr.mxu0 %v2062_v55 }
0x10b7   : > { %2583 = vmatpush3.msra.mxu0 %v2062_v55  ;;  %v2058_v56 = vpop.permute.xlu0 %2057 }
0x10b8   : > { %2584 = vmatprep.subr.mxu0 %v2058_v56 }
0x10b9   : > { %v2056_v57 = vpop.permute.xlu1 %2055  ;;  %2585 = vmatpush3.msra.mxu0 %v2058_v56 }
0x10ba   : > { %2586 = vmatprep.subr.mxu0 %v2056_v57 }
0x10bb   : > { %2587 = vmatpush3.msra.mxu0 %v2056_v57  ;;  %v2052_v58 = vpop.permute.xlu0 %2051 }
0x10bc   : > { %2588 = vmatprep.subr.mxu0 %v2052_v58 }
0x10bd   : > { %v2050_v59 = vpop.permute.xlu1 %2049  ;;  %2589 = vmatpush3.msra.mxu0 %v2052_v58 }
0x10be   : > { %2590 = vmatprep.subr.mxu0 %v2050_v59 }
0x10bf   : > { %2591 = vmatpush3.msra.mxu0 %v2050_v59 }
0x10c0   : > { %2592 = vmatprep.subr.mxu0 %v2046_v40 }
0x10c1   : > { %2593 = vmatpush3.msra.mxu0 %v2046_v40 }
0x10c2   : > { %2594 = vmatprep.subr.mxu0 %v2045_v41 }
0x10c3   : > { %2595 = vmatpush3.msra.mxu0 %v2045_v41 }
0x10c4   : > { %2597 = vmatmul.mubr.msk.f32.vlgmr.msra.gmra.mxu0 %vm2087_vm10, %v2086_v60 }
0x10c8   : > { %v2174_v62 = vpop.permute.xlu0 %2173 }
0x10ca   : > { %v2179_v61 = vpop.permute.xlu1 %2178 }
0x10cc   : > { %v2188_v6 = vpop.permute.xlu0 %2187 }
0x10ce   : > { %v2193_v2 = vpop.permute.xlu1 %2192 }
0x1184   : > { %v2598_v63 = vpop.f32.mrf.mxu0 }
0x1185   : > { %v2182_v0 = vmul.f32 %v2598_v63, %v2179_v61 }
0x1186   : > { %v2160_v3 = vpop.f32.mrf.mxu0 }
0x1187   : > { %v2196_v4 = vadd.f32 %v2193_v2, %v2182_v0  ;;  %v2181_v5 = vmul.f32 %v2174_v62, %v2160_v3 }
0x1189   : > { %v2198_v52 = vmax.f32 %v2196_v4, 0.0  ;;  %v2195_v7 = vadd.f32 %v2188_v6, %v2181_v5 }
0x118b   : > { %2200 = vst.msk [vmem:[%s539_s22 + $0x8] sm:$0xff] %vm826_vm2, %v2198_v52  ;;  %v2197_v8 = vmax.f32 %v2195_v7, 0.0 }
0x118d   : > { %2199 = vst.msk [vmem:[%s539_s22] sm:$0xff] %vm826_vm2, %v2197_v8 }
0x118e   : > { %2691 = shalt.err (!%p2688_p3)
}
0x118f   : > { %s2692_s21 = scalar_lea.hbm %s3236_s26, 256  ;;  %s2696_s29 = scalar_lea.hbm %s3299_s17, 512 }
0x1190   : > { %p2693_p4 = scmp.ne.s32.totalorder %s3236_s26, %s2692_s21  ;;  %p2697_p9 = scmp.lt.s32.totalorder %s3236_s26, %s3299_s17 }
0x1191   : > { %p2698_p10 = scmp.lt.s32.totalorder %s2696_s29, %s2692_s21 }
0x1192   : > { %p2694_p7 = pnand %p2693_p4, %p2891_p5 }
0x1193   : > { %p2699_p11 = por %p2698_p10, %p2697_p9 }
0x1194   : > { %p2695_p8 = pneg %p2694_p7 }
0x1196   : > { %p2700_p12 = pnand %p2699_p11, %p2695_p8 }
0x1198   : > { %2703 = shalt.err (!%p2700_p12)
}
0x1199   : > { %s2761_s18 = smov 128   ;;  %s2762_s0 = smov 8  }
0x119a   : > { %2599 = dma.vmem_to_hbm [thread:$0]  (%p2891_p5), %s3238_s20, 256, %s3236_s26, %s3242_s28, %s2761_s18, %s2761_s18, %s2762_s0  }
0x119b PF: > { %s3327_s30 = sld [smem:[#allocation9_spill]] }
0x119c   : > { %s3328_s27 = sld [smem:[#allocation7_spill]] }
0x11a1   : > { %p2605_p13 = scmp.ge.s32.totalorder %s3327_s30, 2 }
0x11a2   : > { %s2230_s2 = sand.u32 1, %s3328_s27  }
0x11a3   : > { %p2602_p0 = pnand %p2605_p13, %p2895_p6  ;;  %s2231_s21 = scalar_lea.sflag [#allocation5], %s2230_s2 }
0x11a5   : > { %p2603_p1 = pneg %p2602_p0 }
0x11a7   : > { %2721 = dma.done.wait (%p2603_p1), %s2231_s21, 256  }
0x11a8   : > { %2723 = vsyncadd (%p2603_p1), %s2231_s21, 4294967040  ;;  %s3330_s27 = sld [smem:[#allocation10_spill]]  ;;  %s3333_s24 = smov %s2730_s25 }
0x11a9   : > { %s3331_s29 = sld [smem:[#allocation8_spill]] }
0x11aa   : > { %s3332_s26 = sld [smem:[#allocation11_spill]] }
0x11ae   : > { %p27_p2 = scmp.ge.s32.totalorder %s3330_s27, 4  }
0x11af   : > { %s3334_s25 = smov %s3331_s29 }
0x11b0   :  { %29 = sbr.rel (!%p27_p2) target bundleno = 7 (0x7), region = 126 }
0x11b5   :  { %2236 = vsyncpa [#allocation5], 1 }
0x11b6   :  { %2238 = vsyncpa [#allocation5 + $0x1], 1 }

</bundles_post_ra>
